<compile_context>
chip_gen: v6e
topology: v6e:2x2x1
jax: 0.10.0
libtpu: 0.0.40
codegen_flags: <defaults>
</compile_context>

<pallas_src>
import jax
import jax.numpy as jnp
import numpy as np
from jax import lax
from jax.experimental import pallas as pl
from jax.experimental.pallas import tpu as pltpu

LRELU_SLOPE = 0.1
HW = 128   # halo width (lane aligned) >= total receptive field sum_s(d_s + 1) = 12
GW = 128   # guard width of the conv-operand scratch (keeps every store lane aligned)


def get_padding(kernel_size, dilation=1):
    return int((kernel_size * dilation - dilation) / 2)


def _make_kernel(C, K, S, T_BLK, T_round, dilations, use_mask, op_dtype):
    TW = T_BLK + 2 * HW
    TP = TW + 2 * GW
    pad2 = get_padding(K, 1)

    def leaky(v):
        return jnp.where(v >= 0.0, v, LRELU_SLOPE * v)

    def kernel(*refs):
        if use_mask:
            (x_ref, xany_ref, m_ref, w1_ref, b1_ref, w2_ref, b2_ref,
             o_ref, a_ref, bpad_ref, bcol_ref, sem) = refs
        else:
            (x_ref, xany_ref, w1_ref, b1_ref, w2_ref, b2_ref,
             o_ref, a_ref, bpad_ref, bcol_ref, sem) = refs

        b = pl.program_id(0)
        t = pl.program_id(1)
        nt = pl.num_programs(1)

        # ---- start the two halo DMAs straight out of HBM (x passed via pl.ANY). ----
        # Clamped starts always stay in range; on boundary tiles the (duplicated) halo
        # data is neutralised below by the mask (mask path) or fix_global_boundary
        # (no-mask path), exactly reproducing Conv1d zero padding.
        left = pl.multiple_of(jnp.maximum(t * T_BLK - HW, 0), 128)
        right = pl.multiple_of(jnp.minimum((t + 1) * T_BLK, T_round - HW), 128)
        cp_l = pltpu.make_async_copy(xany_ref.at[b, :, pl.ds(left, HW)],
                                     a_ref.at[:, 0:HW], sem.at[0])
        cp_r = pltpu.make_async_copy(xany_ref.at[b, :, pl.ds(right, HW)],
                                     a_ref.at[:, HW + T_BLK:TW], sem.at[1])
        cp_l.start()
        cp_r.start()

        # Zero the guard bands of the conv-operand scratch (the +-k*d shifted tap reads
        # then pick up exact zeros just outside the wide window).
        bpad_ref[:, :GW] = jnp.zeros((C, GW), op_dtype)
        bpad_ref[:, GW + TW:] = jnp.zeros((C, GW), op_dtype)

        # Centre of the residual stream comes from the auto-pipelined block (f32),
        # lane-aligned store.
        a_ref[:, HW:HW + T_BLK] = x_ref[0].astype(jnp.float32)

        if use_mask:
            mw = m_ref[0, 0].astype(jnp.float32)              # (1, TW)

        cp_l.wait()
        cp_r.wait()

        def fix_global_boundary():
            # Mask-free path only: zero the conv input at the out-of-sequence halo
            # columns of the first/last time tile (= Conv1d zero padding).
            @pl.when(t == 0)
            def _():
                bpad_ref[:, GW:GW + HW] = jnp.zeros((C, HW), op_dtype)

            @pl.when(t == nt - 1)
            def _():
                bpad_ref[:, GW + HW + T_BLK:GW + TW] = jnp.zeros((C, HW), op_dtype)

        def conv(w_ref, b_ref, s, d, p, vals):
            # im2col: row-block k of bcol holds the conv input shifted by (k*d - p), so
            # the whole K-tap conv is a single MXU matmul with a K*C-deep contraction.
            bpad_ref[:, GW:GW + TW] = vals.astype(op_dtype)
            if not use_mask:
                fix_global_boundary()
            for k in range(K):
                st = GW + k * d - p
                bcol_ref[k * C:(k + 1) * C, :] = bpad_ref[:, st:st + TW]
            return jnp.dot(w_ref[s], bcol_ref[...],
                           preferred_element_type=jnp.float32) + b_ref[s]

        for s in range(S):
            d = dilations[s]
            p1 = get_padding(K, d)

            # ---- conv1 (dilation d) ----
            xt = leaky(a_ref[...])
            if use_mask:
                xt = xt * mw
            acc = conv(w1_ref, b1_ref, s, d, p1, xt)

            # ---- conv2 (dilation 1) ----
            yt = leaky(acc)
            if use_mask:
                yt = yt * mw
            acc2 = conv(w2_ref, b2_ref, s, 1, pad2, yt)

            # residual add (f32 stream), whole-scratch lane-aligned store
            a_ref[...] = acc2 + a_ref[...]

        out = a_ref[:, HW:HW + T_BLK]
        if use_mask:
            out = out * mw[:, HW:HW + T_BLK]
        o_ref[0] = out.astype(o_ref.dtype)

    return kernel


def make_resblock1(channels, kernel_size=3, dilations=(1, 3, 5), t_block=None):
    """Returns forward(x, w1, b1, w2, b2, x_mask=None) for ResBlock1.

    x: (B, C, T); w1, w2: (S, C_out, C_in, K); b1, b2: (S, C).
    t_block (time tile width, multiple of 128) defaults adaptively from the chip's VMEM
    capacity (large on v5e/v6e, smaller on v7x).
    """
    C, K, S = channels, kernel_size, len(dilations)
    dilations = tuple(dilations)
    rf = sum(get_padding(K, d) + get_padding(K, 1) for d in dilations)
    assert rf <= HW, "dilations/kernel too large for the fixed 128-column halo"

    # bf16 MXU operands for production channel counts; plain f32 for tiny C (avoids
    # bf16 sublane-packing corner cases and those shapes are memory-bound anyway).
    op_dtype = jnp.bfloat16 if (C % 16 == 0) else jnp.float32
    op_bytes = 2 if op_dtype == jnp.bfloat16 else 4

    def _est_vmem(t_blk):
        TW = t_blk + 2 * HW
        TP = TW + 2 * GW
        e = 2 * 2 * 4 * C * t_blk                 # x + out blocks, double buffered
        e += 4 * C * TW                           # residual scratch (f32)
        e += op_bytes * (C * TP + K * C * TW)     # conv-input + im2col scratches
        e += 2 * op_bytes * S * K * C * C         # folded weights (single buffered)
        e += 2 * 4 * S * C + 2 * 4 * TW           # biases + mask block
        return e

    try:
        vmem_cap = int(pltpu.get_tpu_info().vmem_capacity_bytes)
    except Exception:
        vmem_cap = 64 * 1024 * 1024               # v7x-safe fallback

    if t_block is None:
        t_block = 256
        for cand in (4096, 2048, 1024, 512):
            if _est_vmem(cand) <= 0.55 * vmem_cap:
                t_block = cand
                break
    assert t_block % 128 == 0, "t_block must be a multiple of 128 lanes"

    vmem_limit = int(min(0.9 * vmem_cap,
                         max(48 * 1024 * 1024,
                             _est_vmem(t_block) + 16 * 1024 * 1024)))

    def forward(x, w1, b1, w2, b2, x_mask=None):
        B, Cx, T = x.shape
        assert Cx == C
        T_BLK = t_block
        NT = pl.cdiv(T, T_BLK)
        T_round = NT * T_BLK
        TW = T_BLK + 2 * HW
        TP = TW + 2 * GW

        # Mask-free fast path only when no internal padding column can leak into a valid
        # output's receptive field.
        use_mask = (x_mask is not None) or (T_round != T)

        x_r = x.astype(jnp.float32)
        if T_round != T:
            x_r = jnp.pad(x_r, ((0, 0), (0, 0), (0, T_round - T)))

        # x is passed twice (same buffer): auto-pipelined centre block + raw HBM ref for
        # the two 128-column halo DMAs.  No wrapper-side halo materialization.
        inputs = [x_r, x_r]
        in_specs = [
            pl.BlockSpec((1, C, T_BLK), lambda b, t: (b, 0, t)),
            pl.BlockSpec(memory_space=pl.ANY),
        ]

        if use_mask:
            m = jnp.ones((B, 1, T), jnp.float32) if x_mask is None \
                else x_mask.astype(jnp.float32)
            m_r = jnp.pad(m, ((0, 0), (0, 0), (HW, HW + T_round - T)))
            m_wide = jnp.stack(
                [m_r[:, :, t * T_BLK:t * T_BLK + TW] for t in range(NT)],
                axis=1)                                       # (B, NT, 1, TW)
            inputs.append(m_wide)
            in_specs.append(pl.BlockSpec((1, 1, 1, TW), lambda b, t: (b, t, 0, 0)))

        # Fold the K taps into the contraction dim: (S, C_out, K*C_in).  Whole-array
        # VMEM residency -> fetched from HBM once and single-buffered for the grid.
        wcat1 = jnp.transpose(w1, (0, 1, 3, 2)).reshape(S, C, K * C).astype(op_dtype)
        wcat2 = jnp.transpose(w2, (0, 1, 3, 2)).reshape(S, C, K * C).astype(op_dtype)
        b1_r = b1[..., None].astype(jnp.float32)              # (S, C, 1)
        b2_r = b2[..., None].astype(jnp.float32)
        inputs += [wcat1, b1_r, wcat2, b2_r]
        in_specs += [pl.BlockSpec(memory_space=pltpu.MemorySpace.VMEM)] * 4

        kernel = _make_kernel(C, K, S, T_BLK, T_round, dilations, use_mask, op_dtype)

        flops = 2 * B * NT * S * 2 * (K * C) * C * TW
        bytes_accessed = (2 * 4 * B * C * T_round + 4 * B * NT * 2 * HW * C
                          + 2 * op_bytes * S * K * C * C + 2 * 4 * S * C)
        if use_mask:
            bytes_accessed += 4 * B * NT * TW

        out = pl.pallas_call(
            kernel,
            out_shape=jax.ShapeDtypeStruct((B, C, T_round), x.dtype),
            grid_spec=pltpu.PrefetchScalarGridSpec(
                num_scalar_prefetch=0,
                grid=(B, NT),
                in_specs=in_specs,
                out_specs=pl.BlockSpec((1, C, T_BLK), lambda b, t: (b, 0, t)),
                scratch_shapes=[
                    pltpu.VMEM((C, TW), jnp.float32),         # residual stream
                    pltpu.VMEM((C, TP), op_dtype),            # conv input (guarded)
                    pltpu.VMEM((K * C, TW), op_dtype),        # im2col operand
                    pltpu.SemaphoreType.DMA((2,)),            # halo DMA completion
                ]),
            compiler_params=pltpu.CompilerParams(
                dimension_semantics=("parallel", "parallel"),
                vmem_limit_bytes=vmem_limit),
            cost_estimate=pl.CostEstimate(
                flops=flops, transcendentals=0, bytes_accessed=bytes_accessed),
        )(*inputs)
        return out[:, :, :T]

    return forward


def resblock1_ref(x, w1, b1, w2, b2, dilations, x_mask=None, kernel_size=3):
    """Pure-JAX reference matching the PyTorch forward."""
    def leaky(v):
        return jnp.where(v >= 0, v, LRELU_SLOPE * v)
    dn = ('NCH', 'OIH', 'NCH')
    for s, d in enumerate(dilations):
        xt = leaky(x)
        if x_mask is not None:
            xt = xt * x_mask
        p = get_padding(kernel_size, d)
        xt = lax.conv_general_dilated(xt, w1[s], (1,), [(p, p)],
                                      rhs_dilation=(d,), dimension_numbers=dn)
        xt = xt + b1[s][None, :, None]
        xt = leaky(xt)
        if x_mask is not None:
            xt = xt * x_mask
        p = get_padding(kernel_size, 1)
        xt = lax.conv_general_dilated(xt, w2[s], (1,), [(p, p)],
                                      rhs_dilation=(1,), dimension_numbers=dn)
        xt = xt + b2[s][None, :, None]
        x = xt + x
    if x_mask is not None:
        x = x * x_mask
    return x


def init_conv_weightnorm(key, channels, kernel_size, std=0.01):
    """Synthetic weights reproducing the weight_norm parametrization:
    weight = g * v / ||v||, g initialised to ||v|| (per output channel)."""
    kv, kb = jax.random.split(key)
    v = jax.random.normal(kv, (channels, channels, kernel_size), jnp.float32) * std
    norm = jnp.sqrt(jnp.sum(v * v, axis=(1, 2), keepdims=True))
    w = norm * v / norm
    bound = 1.0 / np.sqrt(channels * kernel_size)
    b = jax.random.uniform(kb, (channels,), jnp.float32, -bound, bound)
    return w, b


if __name__ == "__main__":
    def run_case(C, T, t_block, with_mask, tol, key):
        K = 3
        dilations = (1, 3, 5)
        keys = jax.random.split(key, 8)
        w1s, b1s, w2s, b2s = [], [], [], []
        for s in range(3):
            w, b = init_conv_weightnorm(keys[s], C, K)
            w1s.append(w); b1s.append(b)
            w, b = init_conv_weightnorm(keys[3 + s], C, K)
            w2s.append(w); b2s.append(b)
        w1 = jnp.stack(w1s); b1 = jnp.stack(b1s)
        w2 = jnp.stack(w2s); b2 = jnp.stack(b2s)
        x = jax.random.normal(keys[6], (2, C, T), jnp.float32)
        mask = None
        if with_mask:
            mask = (jax.random.uniform(keys[7], (2, 1, T)) > 0.2).astype(jnp.float32)
        fwd = make_resblock1(C, kernel_size=K, dilations=dilations, t_block=t_block)
        out = jax.block_until_ready(fwd(x, w1, b1, w2, b2, x_mask=mask))
        ref = resblock1_ref(x, w1, b1, w2, b2, dilations, x_mask=mask, kernel_size=K)
        np.testing.assert_allclose(np.asarray(out), np.asarray(ref),
                                   atol=tol, rtol=tol)

    key = jax.random.PRNGKey(0)
    k1, k2, k3, k4 = jax.random.split(key, 4)

    # (1) tiny C (f32-operand fallback path), no mask, T a multiple of the time tile.
    run_case(C=8, T=256, t_block=128, with_mask=False, tol=1e-2, key=k1)
    # (2) explicit {0,1} mask.
    run_case(C=8, T=256, t_block=128, with_mask=True, tol=1e-2, key=k2)
    # (3) no mask, ragged T (internal padding + synthesized mask).
    run_case(C=8, T=200, t_block=128, with_mask=False, tol=1e-2, key=k3)
    # (4) packed production path (bf16 operands, folded-K single-matmul convs).
    run_case(C=16, T=256, t_block=128, with_mask=False, tol=2e-2, key=k4)

    print("KERNEL_OK")
</pallas_src>

<mosaic_0001>
module attributes {stable_mosaic.version = 11 : i64} {
  func.func @kernel(%arg0: i32, %arg1: i32, %arg2: memref<1x8x128xf32, #tpu.memory_space<vmem>>, %arg3: memref<2x8x256xf32, #tpu.memory_space<any>>, %arg4: memref<3x8x24xf32, #tpu.memory_space<vmem>>, %arg5: memref<3x8x1xf32, #tpu.memory_space<vmem>>, %arg6: memref<3x8x24xf32, #tpu.memory_space<vmem>>, %arg7: memref<3x8x1xf32, #tpu.memory_space<vmem>>, %arg8: memref<1x8x128xf32, #tpu.memory_space<vmem>>, %arg9: memref<8x384xf32, #tpu.memory_space<vmem>>, %arg10: memref<8x640xf32, #tpu.memory_space<vmem>>, %arg11: memref<24x384xf32, #tpu.memory_space<vmem>>, %arg12: memref<2x!tpu.dma_semaphore, #tpu.memory_space<semaphore_mem>>) attributes {dimension_semantics = [#tpu.dimension_semantics<parallel>, #tpu.dimension_semantics<parallel>], iteration_bounds = array<i64: 2, 2>, scalar_prefetch = 0 : i64, scratch_operands = 4 : i64, tpu.core_type = #tpu.core_type<tc>, window_params = [{transform_indices = @transform_0, window_bounds = array<i64: 1, 8, 128>}, {}, {pipeline_mode = #tpu.pipeline_mode<synchronous>, transform_indices = @transform_2, window_bounds = array<i64: 3, 8, 24>}, {pipeline_mode = #tpu.pipeline_mode<synchronous>, transform_indices = @transform_3, window_bounds = array<i64: 3, 8, 1>}, {pipeline_mode = #tpu.pipeline_mode<synchronous>, transform_indices = @transform_4, window_bounds = array<i64: 3, 8, 24>}, {pipeline_mode = #tpu.pipeline_mode<synchronous>, transform_indices = @transform_5, window_bounds = array<i64: 3, 8, 1>}, {transform_indices = @transform_6, window_bounds = array<i64: 1, 8, 128>}]} {
    %c128_i32 = arith.constant 128 : i32
    %0 = arith.muli %arg1, %c128_i32 : i32
    %c128_i32_0 = arith.constant 128 : i32
    %1 = arith.subi %0, %c128_i32_0 : i32
    %c0_i32 = arith.constant 0 : i32
    %2 = arith.maxsi %1, %c0_i32 : i32
    %3 = tpu.assume_multiple %2, 128 : i32
    %c1_i32 = arith.constant 1 : i32
    %4 = arith.addi %arg1, %c1_i32 : i32
    %c128_i32_1 = arith.constant 128 : i32
    %5 = arith.muli %4, %c128_i32_1 : i32
    %c128_i32_2 = arith.constant 128 : i32
    %6 = arith.minsi %5, %c128_i32_2 : i32
    %7 = tpu.assume_multiple %6, 128 : i32
    %c0_i32_3 = arith.constant 0 : i32
    %c0_i32_4 = arith.constant 0 : i32
    %8 = tpu.memref_slice %arg3[%arg0, %c0_i32_4, %3] : memref<2x8x256xf32, #tpu.memory_space<any>> -> memref<1x8x128xf32, #tpu.memory_space<any>>
    %9 = tpu.memref_squeeze %8 : memref<1x8x128xf32, #tpu.memory_space<any>> -> memref<8x128xf32, #tpu.memory_space<any>>
    %c0_i32_5 = arith.constant 0 : i32
    %c0_i32_6 = arith.constant 0 : i32
    %10 = tpu.memref_slice %arg9[%c0_i32_5, %c0_i32_6] : memref<8x384xf32, #tpu.memory_space<vmem>> -> memref<8x128xf32, #tpu.memory_space<vmem>>
    %11 = tpu.memref_slice %arg12[%c0_i32_3] : memref<2x!tpu.dma_semaphore, #tpu.memory_space<semaphore_mem>> -> memref<1x!tpu.dma_semaphore, #tpu.memory_space<semaphore_mem>>
    %12 = tpu.memref_squeeze %11 : memref<1x!tpu.dma_semaphore, #tpu.memory_space<semaphore_mem>> -> memref<!tpu.dma_semaphore, #tpu.memory_space<semaphore_mem>>
    tpu.enqueue_dma source(%9 : memref<8x128xf32, #tpu.memory_space<any>>) target(%10 : memref<8x128xf32, #tpu.memory_space<vmem>>) target_semaphore(%12 : memref<!tpu.dma_semaphore, #tpu.memory_space<semaphore_mem>>)
    %c1_i32_7 = arith.constant 1 : i32
    %c0_i32_8 = arith.constant 0 : i32
    %13 = tpu.memref_slice %arg3[%arg0, %c0_i32_8, %7] : memref<2x8x256xf32, #tpu.memory_space<any>> -> memref<1x8x128xf32, #tpu.memory_space<any>>
    %14 = tpu.memref_squeeze %13 : memref<1x8x128xf32, #tpu.memory_space<any>> -> memref<8x128xf32, #tpu.memory_space<any>>
    %c0_i32_9 = arith.constant 0 : i32
    %c256_i32 = arith.constant 256 : i32
    %15 = tpu.memref_slice %arg9[%c0_i32_9, %c256_i32] : memref<8x384xf32, #tpu.memory_space<vmem>> -> memref<8x128xf32, #tpu.memory_space<vmem>>
    %16 = tpu.memref_slice %arg12[%c1_i32_7] : memref<2x!tpu.dma_semaphore, #tpu.memory_space<semaphore_mem>> -> memref<1x!tpu.dma_semaphore, #tpu.memory_space<semaphore_mem>>
    %17 = tpu.memref_squeeze %16 : memref<1x!tpu.dma_semaphore, #tpu.memory_space<semaphore_mem>> -> memref<!tpu.dma_semaphore, #tpu.memory_space<semaphore_mem>>
    tpu.enqueue_dma source(%14 : memref<8x128xf32, #tpu.memory_space<any>>) target(%15 : memref<8x128xf32, #tpu.memory_space<vmem>>) target_semaphore(%17 : memref<!tpu.dma_semaphore, #tpu.memory_space<semaphore_mem>>)
    %cst = arith.constant 0.000000e+00 : f32
    %18 = vector.broadcast %cst : f32 to vector<8x128xf32>
    %c0 = arith.constant 0 : index
    %c0_10 = arith.constant 0 : index
    %19 = vector.load %arg10[%c0, %c0_10] : memref<8x640xf32, #tpu.memory_space<vmem>>, vector<8x128xf32>
    tpu.vector_store %arg10[%c0, %c0_10], %18 {strides = array<i32>} : memref<8x640xf32, #tpu.memory_space<vmem>>, vector<8x128xf32>,
    %cst_11 = arith.constant 0.000000e+00 : f32
    %20 = vector.broadcast %cst_11 : f32 to vector<8x128xf32>
    %c0_12 = arith.constant 0 : index
    %c512 = arith.constant 512 : index
    %21 = vector.load %arg10[%c0_12, %c512] : memref<8x640xf32, #tpu.memory_space<vmem>>, vector<8x128xf32>
    tpu.vector_store %arg10[%c0_12, %c512], %20 {strides = array<i32>} : memref<8x640xf32, #tpu.memory_space<vmem>>, vector<8x128xf32>,
    %c0_13 = arith.constant 0 : index
    %c0_14 = arith.constant 0 : index
    %c0_15 = arith.constant 0 : index
    %22 = vector.load %arg2[%c0_13, %c0_14, %c0_15] : memref<1x8x128xf32, #tpu.memory_space<vmem>>, vector<1x8x128xf32>
    %23 = vector.shape_cast %22 : vector<1x8x128xf32> to vector<8x128xf32>
    %c0_16 = arith.constant 0 : index
    %c128 = arith.constant 128 : index
    %24 = vector.load %arg9[%c0_16, %c128] : memref<8x384xf32, #tpu.memory_space<vmem>>, vector<8x128xf32>
    tpu.vector_store %arg9[%c0_16, %c128], %23 {strides = array<i32>} : memref<8x384xf32, #tpu.memory_space<vmem>>, vector<8x128xf32>,
    %c0_i32_17 = arith.constant 0 : i32
    %c0_i32_18 = arith.constant 0 : i32
    %25 = tpu.memref_slice %arg3[%arg0, %c0_i32_18, %3] : memref<2x8x256xf32, #tpu.memory_space<any>> -> memref<1x8x128xf32, #tpu.memory_space<any>>
    %26 = tpu.memref_squeeze %25 : memref<1x8x128xf32, #tpu.memory_space<any>> -> memref<8x128xf32, #tpu.memory_space<any>>
    %c0_i32_19 = arith.constant 0 : i32
    %c0_i32_20 = arith.constant 0 : i32
    %27 = tpu.memref_slice %arg9[%c0_i32_19, %c0_i32_20] : memref<8x384xf32, #tpu.memory_space<vmem>> -> memref<8x128xf32, #tpu.memory_space<vmem>>
    %28 = tpu.memref_slice %arg12[%c0_i32_17] : memref<2x!tpu.dma_semaphore, #tpu.memory_space<semaphore_mem>> -> memref<1x!tpu.dma_semaphore, #tpu.memory_space<semaphore_mem>>
    %29 = tpu.memref_squeeze %28 : memref<1x!tpu.dma_semaphore, #tpu.memory_space<semaphore_mem>> -> memref<!tpu.dma_semaphore, #tpu.memory_space<semaphore_mem>>
    tpu.wait_dma2 semaphore(%29 : memref<!tpu.dma_semaphore, #tpu.memory_space<semaphore_mem>>) src(%26 : memref<8x128xf32, #tpu.memory_space<any>>) dst(%27 : memref<8x128xf32, #tpu.memory_space<vmem>>)
    %c1_i32_21 = arith.constant 1 : i32
    %c0_i32_22 = arith.constant 0 : i32
    %30 = tpu.memref_slice %arg3[%arg0, %c0_i32_22, %7] : memref<2x8x256xf32, #tpu.memory_space<any>> -> memref<1x8x128xf32, #tpu.memory_space<any>>
    %31 = tpu.memref_squeeze %30 : memref<1x8x128xf32, #tpu.memory_space<any>> -> memref<8x128xf32, #tpu.memory_space<any>>
    %c0_i32_23 = arith.constant 0 : i32
    %c256_i32_24 = arith.constant 256 : i32
    %32 = tpu.memref_slice %arg9[%c0_i32_23, %c256_i32_24] : memref<8x384xf32, #tpu.memory_space<vmem>> -> memref<8x128xf32, #tpu.memory_space<vmem>>
    %33 = tpu.memref_slice %arg12[%c1_i32_21] : memref<2x!tpu.dma_semaphore, #tpu.memory_space<semaphore_mem>> -> memref<1x!tpu.dma_semaphore, #tpu.memory_space<semaphore_mem>>
    %34 = tpu.memref_squeeze %33 : memref<1x!tpu.dma_semaphore, #tpu.memory_space<semaphore_mem>> -> memref<!tpu.dma_semaphore, #tpu.memory_space<semaphore_mem>>
    tpu.wait_dma2 semaphore(%34 : memref<!tpu.dma_semaphore, #tpu.memory_space<semaphore_mem>>) src(%31 : memref<8x128xf32, #tpu.memory_space<any>>) dst(%32 : memref<8x128xf32, #tpu.memory_space<vmem>>)
    %c0_25 = arith.constant 0 : index
    %c0_26 = arith.constant 0 : index
    %35 = vector.load %arg9[%c0_25, %c0_26] : memref<8x384xf32, #tpu.memory_space<vmem>>, vector<8x384xf32>
    %cst_27 = arith.constant 0.000000e+00 : f32
    %36 = vector.broadcast %cst_27 : f32 to vector<8x384xf32>
    %37 = arith.cmpf oge, %35, %36 : vector<8x384xf32>
    %cst_28 = arith.constant 1.000000e-01 : f32
    %38 = vector.broadcast %cst_28 : f32 to vector<8x384xf32>
    %39 = arith.mulf %38, %35 : vector<8x384xf32>
    %40 = arith.select %37, %35, %39 : vector<8x384xi1>, vector<8x384xf32>
    %c0_29 = arith.constant 0 : index
    %c128_30 = arith.constant 128 : index
    %41 = vector.load %arg10[%c0_29, %c128_30] : memref<8x640xf32, #tpu.memory_space<vmem>>, vector<8x384xf32>
    tpu.vector_store %arg10[%c0_29, %c128_30], %40 {strides = array<i32>} : memref<8x640xf32, #tpu.memory_space<vmem>>, vector<8x384xf32>,
    %c0_i32_31 = arith.constant 0 : i32
    %42 = arith.cmpi eq, %arg1, %c0_i32_31 : i32
    %43 = arith.extui %42 : i1 to i32
    %c0_i32_32 = arith.constant 0 : i32
    %44 = arith.cmpi ne, %43, %c0_i32_32 : i32
    scf.if %44 {
      %cst_212 = arith.constant 0.000000e+00 : f32
      %207 = vector.broadcast %cst_212 : f32 to vector<8x128xf32>
      %c0_213 = arith.constant 0 : index
      %c128_214 = arith.constant 128 : index
      %208 = vector.load %arg10[%c0_213, %c128_214] : memref<8x640xf32, #tpu.memory_space<vmem>>, vector<8x128xf32>
      tpu.vector_store %arg10[%c0_213, %c128_214], %207 {strides = array<i32>} : memref<8x640xf32, #tpu.memory_space<vmem>>, vector<8x128xf32>,
    } else {
    }
    %c1_i32_33 = arith.constant 1 : i32
    %45 = arith.cmpi eq, %arg1, %c1_i32_33 : i32
    %46 = arith.extui %45 : i1 to i32
    %c0_i32_34 = arith.constant 0 : i32
    %47 = arith.cmpi ne, %46, %c0_i32_34 : i32
    scf.if %47 {
      %cst_212 = arith.constant 0.000000e+00 : f32
      %207 = vector.broadcast %cst_212 : f32 to vector<8x128xf32>
      %c0_213 = arith.constant 0 : index
      %c384 = arith.constant 384 : index
      %208 = vector.load %arg10[%c0_213, %c384] : memref<8x640xf32, #tpu.memory_space<vmem>>, vector<8x128xf32>
      tpu.vector_store %arg10[%c0_213, %c384], %207 {strides = array<i32>} : memref<8x640xf32, #tpu.memory_space<vmem>>, vector<8x128xf32>,
    } else {
    }
    %c0_35 = arith.constant 0 : index
    %c127 = arith.constant 127 : index
    %48 = vector.load %arg10[%c0_35, %c127] : memref<8x640xf32, #tpu.memory_space<vmem>>, vector<8x384xf32>
    %c0_36 = arith.constant 0 : index
    %c0_37 = arith.constant 0 : index
    %49 = vector.load %arg11[%c0_36, %c0_37] : memref<24x384xf32, #tpu.memory_space<vmem>>, vector<8x384xf32>
    tpu.vector_store %arg11[%c0_36, %c0_37], %48 {strides = array<i32>} : memref<24x384xf32, #tpu.memory_space<vmem>>, vector<8x384xf32>,
    %c0_38 = arith.constant 0 : index
    %c128_39 = arith.constant 128 : index
    %50 = vector.load %arg10[%c0_38, %c128_39] : memref<8x640xf32, #tpu.memory_space<vmem>>, vector<8x384xf32>
    %c8 = arith.constant 8 : index
    %c0_40 = arith.constant 0 : index
    %51 = vector.load %arg11[%c8, %c0_40] : memref<24x384xf32, #tpu.memory_space<vmem>>, vector<8x384xf32>
    tpu.vector_store %arg11[%c8, %c0_40], %50 {strides = array<i32>} : memref<24x384xf32, #tpu.memory_space<vmem>>, vector<8x384xf32>,
    %c0_41 = arith.constant 0 : index
    %c129 = arith.constant 129 : index
    %52 = vector.load %arg10[%c0_41, %c129] : memref<8x640xf32, #tpu.memory_space<vmem>>, vector<8x384xf32>
    %c16 = arith.constant 16 : index
    %c0_42 = arith.constant 0 : index
    %53 = vector.load %arg11[%c16, %c0_42] : memref<24x384xf32, #tpu.memory_space<vmem>>, vector<8x384xf32>
    tpu.vector_store %arg11[%c16, %c0_42], %52 {strides = array<i32>} : memref<24x384xf32, #tpu.memory_space<vmem>>, vector<8x384xf32>,
    %c0_43 = arith.constant 0 : index
    %c0_44 = arith.constant 0 : index
    %c0_45 = arith.constant 0 : index
    %54 = vector.load %arg4[%c0_43, %c0_44, %c0_45] : memref<3x8x24xf32, #tpu.memory_space<vmem>>, vector<1x8x24xf32>
    %55 = vector.shape_cast %54 : vector<1x8x24xf32> to vector<8x24xf32>
    %c0_46 = arith.constant 0 : index
    %c0_47 = arith.constant 0 : index
    %56 = vector.load %arg11[%c0_46, %c0_47] : memref<24x384xf32, #tpu.memory_space<vmem>>, vector<24x384xf32>
    %cst_48 = arith.constant dense<0.000000e+00> : vector<8x384xf32>
    %57 = tpu.matmul %55, %56, %cst_48 {dimension_numbers = #tpu.dot_dimension_numbers<[1], [0], [0], [1], [0, 0, 1, 1], [], []>} : vector<8x24xf32>, vector<24x384xf32>, vector<8x384xf32> -> vector<8x384xf32>
    %c0_49 = arith.constant 0 : index
    %c0_50 = arith.constant 0 : index
    %c0_51 = arith.constant 0 : index
    %58 = vector.load %arg5[%c0_49, %c0_50, %c0_51] : memref<3x8x1xf32, #tpu.memory_space<vmem>>, vector<1x8x1xf32>
    %59 = vector.shape_cast %58 : vector<1x8x1xf32> to vector<8x1xf32>
    %60 = vector.broadcast %59 : vector<8x1xf32> to vector<8x384xf32>
    %61 = arith.addf %57, %60 : vector<8x384xf32>
    %cst_52 = arith.constant 0.000000e+00 : f32
    %62 = vector.broadcast %cst_52 : f32 to vector<8x384xf32>
    %63 = arith.cmpf oge, %61, %62 : vector<8x384xf32>
    %cst_53 = arith.constant 1.000000e-01 : f32
    %64 = vector.broadcast %cst_53 : f32 to vector<8x384xf32>
    %65 = arith.mulf %64, %61 : vector<8x384xf32>
    %66 = arith.select %63, %61, %65 : vector<8x384xi1>, vector<8x384xf32>
    %c0_54 = arith.constant 0 : index
    %c128_55 = arith.constant 128 : index
    %67 = vector.load %arg10[%c0_54, %c128_55] : memref<8x640xf32, #tpu.memory_space<vmem>>, vector<8x384xf32>
    tpu.vector_store %arg10[%c0_54, %c128_55], %66 {strides = array<i32>} : memref<8x640xf32, #tpu.memory_space<vmem>>, vector<8x384xf32>,
    %c0_i32_56 = arith.constant 0 : i32
    %68 = arith.cmpi eq, %arg1, %c0_i32_56 : i32
    %69 = arith.extui %68 : i1 to i32
    %c0_i32_57 = arith.constant 0 : i32
    %70 = arith.cmpi ne, %69, %c0_i32_57 : i32
    scf.if %70 {
      %cst_212 = arith.constant 0.000000e+00 : f32
      %207 = vector.broadcast %cst_212 : f32 to vector<8x128xf32>
      %c0_213 = arith.constant 0 : index
      %c128_214 = arith.constant 128 : index
      %208 = vector.load %arg10[%c0_213, %c128_214] : memref<8x640xf32, #tpu.memory_space<vmem>>, vector<8x128xf32>
      tpu.vector_store %arg10[%c0_213, %c128_214], %207 {strides = array<i32>} : memref<8x640xf32, #tpu.memory_space<vmem>>, vector<8x128xf32>,
    } else {
    }
    %c1_i32_58 = arith.constant 1 : i32
    %71 = arith.cmpi eq, %arg1, %c1_i32_58 : i32
    %72 = arith.extui %71 : i1 to i32
    %c0_i32_59 = arith.constant 0 : i32
    %73 = arith.cmpi ne, %72, %c0_i32_59 : i32
    scf.if %73 {
      %cst_212 = arith.constant 0.000000e+00 : f32
      %207 = vector.broadcast %cst_212 : f32 to vector<8x128xf32>
      %c0_213 = arith.constant 0 : index
      %c384 = arith.constant 384 : index
      %208 = vector.load %arg10[%c0_213, %c384] : memref<8x640xf32, #tpu.memory_space<vmem>>, vector<8x128xf32>
      tpu.vector_store %arg10[%c0_213, %c384], %207 {strides = array<i32>} : memref<8x640xf32, #tpu.memory_space<vmem>>, vector<8x128xf32>,
    } else {
    }
    %c0_60 = arith.constant 0 : index
    %c127_61 = arith.constant 127 : index
    %74 = vector.load %arg10[%c0_60, %c127_61] : memref<8x640xf32, #tpu.memory_space<vmem>>, vector<8x384xf32>
    %c0_62 = arith.constant 0 : index
    %c0_63 = arith.constant 0 : index
    %75 = vector.load %arg11[%c0_62, %c0_63] : memref<24x384xf32, #tpu.memory_space<vmem>>, vector<8x384xf32>
    tpu.vector_store %arg11[%c0_62, %c0_63], %74 {strides = array<i32>} : memref<24x384xf32, #tpu.memory_space<vmem>>, vector<8x384xf32>,
    %c0_64 = arith.constant 0 : index
    %c128_65 = arith.constant 128 : index
    %76 = vector.load %arg10[%c0_64, %c128_65] : memref<8x640xf32, #tpu.memory_space<vmem>>, vector<8x384xf32>
    %c8_66 = arith.constant 8 : index
    %c0_67 = arith.constant 0 : index
    %77 = vector.load %arg11[%c8_66, %c0_67] : memref<24x384xf32, #tpu.memory_space<vmem>>, vector<8x384xf32>
    tpu.vector_store %arg11[%c8_66, %c0_67], %76 {strides = array<i32>} : memref<24x384xf32, #tpu.memory_space<vmem>>, vector<8x384xf32>,
    %c0_68 = arith.constant 0 : index
    %c129_69 = arith.constant 129 : index
    %78 = vector.load %arg10[%c0_68, %c129_69] : memref<8x640xf32, #tpu.memory_space<vmem>>, vector<8x384xf32>
    %c16_70 = arith.constant 16 : index
    %c0_71 = arith.constant 0 : index
    %79 = vector.load %arg11[%c16_70, %c0_71] : memref<24x384xf32, #tpu.memory_space<vmem>>, vector<8x384xf32>
    tpu.vector_store %arg11[%c16_70, %c0_71], %78 {strides = array<i32>} : memref<24x384xf32, #tpu.memory_space<vmem>>, vector<8x384xf32>,
    %c0_72 = arith.constant 0 : index
    %c0_73 = arith.constant 0 : index
    %c0_74 = arith.constant 0 : index
    %80 = vector.load %arg6[%c0_72, %c0_73, %c0_74] : memref<3x8x24xf32, #tpu.memory_space<vmem>>, vector<1x8x24xf32>
    %81 = vector.shape_cast %80 : vector<1x8x24xf32> to vector<8x24xf32>
    %c0_75 = arith.constant 0 : index
    %c0_76 = arith.constant 0 : index
    %82 = vector.load %arg11[%c0_75, %c0_76] : memref<24x384xf32, #tpu.memory_space<vmem>>, vector<24x384xf32>
    %cst_77 = arith.constant dense<0.000000e+00> : vector<8x384xf32>
    %83 = tpu.matmul %81, %82, %cst_77 {dimension_numbers = #tpu.dot_dimension_numbers<[1], [0], [0], [1], [0, 0, 1, 1], [], []>} : vector<8x24xf32>, vector<24x384xf32>, vector<8x384xf32> -> vector<8x384xf32>
    %c0_78 = arith.constant 0 : index
    %c0_79 = arith.constant 0 : index
    %c0_80 = arith.constant 0 : index
    %84 = vector.load %arg7[%c0_78, %c0_79, %c0_80] : memref<3x8x1xf32, #tpu.memory_space<vmem>>, vector<1x8x1xf32>
    %85 = vector.shape_cast %84 : vector<1x8x1xf32> to vector<8x1xf32>
    %86 = vector.broadcast %85 : vector<8x1xf32> to vector<8x384xf32>
    %87 = arith.addf %83, %86 : vector<8x384xf32>
    %c0_81 = arith.constant 0 : index
    %c0_82 = arith.constant 0 : index
    %88 = vector.load %arg9[%c0_81, %c0_82] : memref<8x384xf32, #tpu.memory_space<vmem>>, vector<8x384xf32>
    %89 = arith.addf %87, %88 : vector<8x384xf32>
    %c0_83 = arith.constant 0 : index
    %c0_84 = arith.constant 0 : index
    %90 = vector.load %arg9[%c0_83, %c0_84] : memref<8x384xf32, #tpu.memory_space<vmem>>, vector<8x384xf32>
    tpu.vector_store %arg9[%c0_83, %c0_84], %89 {strides = array<i32>} : memref<8x384xf32, #tpu.memory_space<vmem>>, vector<8x384xf32>,
    %c0_85 = arith.constant 0 : index
    %c0_86 = arith.constant 0 : index
    %91 = vector.load %arg9[%c0_85, %c0_86] : memref<8x384xf32, #tpu.memory_space<vmem>>, vector<8x384xf32>
    %cst_87 = arith.constant 0.000000e+00 : f32
    %92 = vector.broadcast %cst_87 : f32 to vector<8x384xf32>
    %93 = arith.cmpf oge, %91, %92 : vector<8x384xf32>
    %cst_88 = arith.constant 1.000000e-01 : f32
    %94 = vector.broadcast %cst_88 : f32 to vector<8x384xf32>
    %95 = arith.mulf %94, %91 : vector<8x384xf32>
    %96 = arith.select %93, %91, %95 : vector<8x384xi1>, vector<8x384xf32>
    %c0_89 = arith.constant 0 : index
    %c128_90 = arith.constant 128 : index
    %97 = vector.load %arg10[%c0_89, %c128_90] : memref<8x640xf32, #tpu.memory_space<vmem>>, vector<8x384xf32>
    tpu.vector_store %arg10[%c0_89, %c128_90], %96 {strides = array<i32>} : memref<8x640xf32, #tpu.memory_space<vmem>>, vector<8x384xf32>,
    %c0_i32_91 = arith.constant 0 : i32
    %98 = arith.cmpi eq, %arg1, %c0_i32_91 : i32
    %99 = arith.extui %98 : i1 to i32
    %c0_i32_92 = arith.constant 0 : i32
    %100 = arith.cmpi ne, %99, %c0_i32_92 : i32
    scf.if %100 {
      %cst_212 = arith.constant 0.000000e+00 : f32
      %207 = vector.broadcast %cst_212 : f32 to vector<8x128xf32>
      %c0_213 = arith.constant 0 : index
      %c128_214 = arith.constant 128 : index
      %208 = vector.load %arg10[%c0_213, %c128_214] : memref<8x640xf32, #tpu.memory_space<vmem>>, vector<8x128xf32>
      tpu.vector_store %arg10[%c0_213, %c128_214], %207 {strides = array<i32>} : memref<8x640xf32, #tpu.memory_space<vmem>>, vector<8x128xf32>,
    } else {
    }
    %c1_i32_93 = arith.constant 1 : i32
    %101 = arith.cmpi eq, %arg1, %c1_i32_93 : i32
    %102 = arith.extui %101 : i1 to i32
    %c0_i32_94 = arith.constant 0 : i32
    %103 = arith.cmpi ne, %102, %c0_i32_94 : i32
    scf.if %103 {
      %cst_212 = arith.constant 0.000000e+00 : f32
      %207 = vector.broadcast %cst_212 : f32 to vector<8x128xf32>
      %c0_213 = arith.constant 0 : index
      %c384 = arith.constant 384 : index
      %208 = vector.load %arg10[%c0_213, %c384] : memref<8x640xf32, #tpu.memory_space<vmem>>, vector<8x128xf32>
      tpu.vector_store %arg10[%c0_213, %c384], %207 {strides = array<i32>} : memref<8x640xf32, #tpu.memory_space<vmem>>, vector<8x128xf32>,
    } else {
    }
    %c0_95 = arith.constant 0 : index
    %c125 = arith.constant 125 : index
    %104 = vector.load %arg10[%c0_95, %c125] : memref<8x640xf32, #tpu.memory_space<vmem>>, vector<8x384xf32>
    %c0_96 = arith.constant 0 : index
    %c0_97 = arith.constant 0 : index
    %105 = vector.load %arg11[%c0_96, %c0_97] : memref<24x384xf32, #tpu.memory_space<vmem>>, vector<8x384xf32>
    tpu.vector_store %arg11[%c0_96, %c0_97], %104 {strides = array<i32>} : memref<24x384xf32, #tpu.memory_space<vmem>>, vector<8x384xf32>,
    %c0_98 = arith.constant 0 : index
    %c128_99 = arith.constant 128 : index
    %106 = vector.load %arg10[%c0_98, %c128_99] : memref<8x640xf32, #tpu.memory_space<vmem>>, vector<8x384xf32>
    %c8_100 = arith.constant 8 : index
    %c0_101 = arith.constant 0 : index
    %107 = vector.load %arg11[%c8_100, %c0_101] : memref<24x384xf32, #tpu.memory_space<vmem>>, vector<8x384xf32>
    tpu.vector_store %arg11[%c8_100, %c0_101], %106 {strides = array<i32>} : memref<24x384xf32, #tpu.memory_space<vmem>>, vector<8x384xf32>,
    %c0_102 = arith.constant 0 : index
    %c131 = arith.constant 131 : index
    %108 = vector.load %arg10[%c0_102, %c131] : memref<8x640xf32, #tpu.memory_space<vmem>>, vector<8x384xf32>
    %c16_103 = arith.constant 16 : index
    %c0_104 = arith.constant 0 : index
    %109 = vector.load %arg11[%c16_103, %c0_104] : memref<24x384xf32, #tpu.memory_space<vmem>>, vector<8x384xf32>
    tpu.vector_store %arg11[%c16_103, %c0_104], %108 {strides = array<i32>} : memref<24x384xf32, #tpu.memory_space<vmem>>, vector<8x384xf32>,
    %c1 = arith.constant 1 : index
    %c0_105 = arith.constant 0 : index
    %c0_106 = arith.constant 0 : index
    %110 = vector.load %arg4[%c1, %c0_105, %c0_106] : memref<3x8x24xf32, #tpu.memory_space<vmem>>, vector<1x8x24xf32>
    %111 = vector.shape_cast %110 : vector<1x8x24xf32> to vector<8x24xf32>
    %c0_107 = arith.constant 0 : index
    %c0_108 = arith.constant 0 : index
    %112 = vector.load %arg11[%c0_107, %c0_108] : memref<24x384xf32, #tpu.memory_space<vmem>>, vector<24x384xf32>
    %cst_109 = arith.constant dense<0.000000e+00> : vector<8x384xf32>
    %113 = tpu.matmul %111, %112, %cst_109 {dimension_numbers = #tpu.dot_dimension_numbers<[1], [0], [0], [1], [0, 0, 1, 1], [], []>} : vector<8x24xf32>, vector<24x384xf32>, vector<8x384xf32> -> vector<8x384xf32>
    %c1_110 = arith.constant 1 : index
    %c0_111 = arith.constant 0 : index
    %c0_112 = arith.constant 0 : index
    %114 = vector.load %arg5[%c1_110, %c0_111, %c0_112] : memref<3x8x1xf32, #tpu.memory_space<vmem>>, vector<1x8x1xf32>
    %115 = vector.shape_cast %114 : vector<1x8x1xf32> to vector<8x1xf32>
    %116 = vector.broadcast %115 : vector<8x1xf32> to vector<8x384xf32>
    %117 = arith.addf %113, %116 : vector<8x384xf32>
    %cst_113 = arith.constant 0.000000e+00 : f32
    %118 = vector.broadcast %cst_113 : f32 to vector<8x384xf32>
    %119 = arith.cmpf oge, %117, %118 : vector<8x384xf32>
    %cst_114 = arith.constant 1.000000e-01 : f32
    %120 = vector.broadcast %cst_114 : f32 to vector<8x384xf32>
    %121 = arith.mulf %120, %117 : vector<8x384xf32>
    %122 = arith.select %119, %117, %121 : vector<8x384xi1>, vector<8x384xf32>
    %c0_115 = arith.constant 0 : index
    %c128_116 = arith.constant 128 : index
    %123 = vector.load %arg10[%c0_115, %c128_116] : memref<8x640xf32, #tpu.memory_space<vmem>>, vector<8x384xf32>
    tpu.vector_store %arg10[%c0_115, %c128_116], %122 {strides = array<i32>} : memref<8x640xf32, #tpu.memory_space<vmem>>, vector<8x384xf32>,
    %c0_i32_117 = arith.constant 0 : i32
    %124 = arith.cmpi eq, %arg1, %c0_i32_117 : i32
    %125 = arith.extui %124 : i1 to i32
    %c0_i32_118 = arith.constant 0 : i32
    %126 = arith.cmpi ne, %125, %c0_i32_118 : i32
    scf.if %126 {
      %cst_212 = arith.constant 0.000000e+00 : f32
      %207 = vector.broadcast %cst_212 : f32 to vector<8x128xf32>
      %c0_213 = arith.constant 0 : index
      %c128_214 = arith.constant 128 : index
      %208 = vector.load %arg10[%c0_213, %c128_214] : memref<8x640xf32, #tpu.memory_space<vmem>>, vector<8x128xf32>
      tpu.vector_store %arg10[%c0_213, %c128_214], %207 {strides = array<i32>} : memref<8x640xf32, #tpu.memory_space<vmem>>, vector<8x128xf32>,
    } else {
    }
    %c1_i32_119 = arith.constant 1 : i32
    %127 = arith.cmpi eq, %arg1, %c1_i32_119 : i32
    %128 = arith.extui %127 : i1 to i32
    %c0_i32_120 = arith.constant 0 : i32
    %129 = arith.cmpi ne, %128, %c0_i32_120 : i32
    scf.if %129 {
      %cst_212 = arith.constant 0.000000e+00 : f32
      %207 = vector.broadcast %cst_212 : f32 to vector<8x128xf32>
      %c0_213 = arith.constant 0 : index
      %c384 = arith.constant 384 : index
      %208 = vector.load %arg10[%c0_213, %c384] : memref<8x640xf32, #tpu.memory_space<vmem>>, vector<8x128xf32>
      tpu.vector_store %arg10[%c0_213, %c384], %207 {strides = array<i32>} : memref<8x640xf32, #tpu.memory_space<vmem>>, vector<8x128xf32>,
    } else {
    }
    %c0_121 = arith.constant 0 : index
    %c127_122 = arith.constant 127 : index
    %130 = vector.load %arg10[%c0_121, %c127_122] : memref<8x640xf32, #tpu.memory_space<vmem>>, vector<8x384xf32>
    %c0_123 = arith.constant 0 : index
    %c0_124 = arith.constant 0 : index
    %131 = vector.load %arg11[%c0_123, %c0_124] : memref<24x384xf32, #tpu.memory_space<vmem>>, vector<8x384xf32>
    tpu.vector_store %arg11[%c0_123, %c0_124], %130 {strides = array<i32>} : memref<24x384xf32, #tpu.memory_space<vmem>>, vector<8x384xf32>,
    %c0_125 = arith.constant 0 : index
    %c128_126 = arith.constant 128 : index
    %132 = vector.load %arg10[%c0_125, %c128_126] : memref<8x640xf32, #tpu.memory_space<vmem>>, vector<8x384xf32>
    %c8_127 = arith.constant 8 : index
    %c0_128 = arith.constant 0 : index
    %133 = vector.load %arg11[%c8_127, %c0_128] : memref<24x384xf32, #tpu.memory_space<vmem>>, vector<8x384xf32>
    tpu.vector_store %arg11[%c8_127, %c0_128], %132 {strides = array<i32>} : memref<24x384xf32, #tpu.memory_space<vmem>>, vector<8x384xf32>,
    %c0_129 = arith.constant 0 : index
    %c129_130 = arith.constant 129 : index
    %134 = vector.load %arg10[%c0_129, %c129_130] : memref<8x640xf32, #tpu.memory_space<vmem>>, vector<8x384xf32>
    %c16_131 = arith.constant 16 : index
    %c0_132 = arith.constant 0 : index
    %135 = vector.load %arg11[%c16_131, %c0_132] : memref<24x384xf32, #tpu.memory_space<vmem>>, vector<8x384xf32>
    tpu.vector_store %arg11[%c16_131, %c0_132], %134 {strides = array<i32>} : memref<24x384xf32, #tpu.memory_space<vmem>>, vector<8x384xf32>,
    %c1_133 = arith.constant 1 : index
    %c0_134 = arith.constant 0 : index
    %c0_135 = arith.constant 0 : index
    %136 = vector.load %arg6[%c1_133, %c0_134, %c0_135] : memref<3x8x24xf32, #tpu.memory_space<vmem>>, vector<1x8x24xf32>
    %137 = vector.shape_cast %136 : vector<1x8x24xf32> to vector<8x24xf32>
    %c0_136 = arith.constant 0 : index
    %c0_137 = arith.constant 0 : index
    %138 = vector.load %arg11[%c0_136, %c0_137] : memref<24x384xf32, #tpu.memory_space<vmem>>, vector<24x384xf32>
    %cst_138 = arith.constant dense<0.000000e+00> : vector<8x384xf32>
    %139 = tpu.matmul %137, %138, %cst_138 {dimension_numbers = #tpu.dot_dimension_numbers<[1], [0], [0], [1], [0, 0, 1, 1], [], []>} : vector<8x24xf32>, vector<24x384xf32>, vector<8x384xf32> -> vector<8x384xf32>
    %c1_139 = arith.constant 1 : index
    %c0_140 = arith.constant 0 : index
    %c0_141 = arith.constant 0 : index
    %140 = vector.load %arg7[%c1_139, %c0_140, %c0_141] : memref<3x8x1xf32, #tpu.memory_space<vmem>>, vector<1x8x1xf32>
    %141 = vector.shape_cast %140 : vector<1x8x1xf32> to vector<8x1xf32>
    %142 = vector.broadcast %141 : vector<8x1xf32> to vector<8x384xf32>
    %143 = arith.addf %139, %142 : vector<8x384xf32>
    %c0_142 = arith.constant 0 : index
    %c0_143 = arith.constant 0 : index
    %144 = vector.load %arg9[%c0_142, %c0_143] : memref<8x384xf32, #tpu.memory_space<vmem>>, vector<8x384xf32>
    %145 = arith.addf %143, %144 : vector<8x384xf32>
    %c0_144 = arith.constant 0 : index
    %c0_145 = arith.constant 0 : index
    %146 = vector.load %arg9[%c0_144, %c0_145] : memref<8x384xf32, #tpu.memory_space<vmem>>, vector<8x384xf32>
    tpu.vector_store %arg9[%c0_144, %c0_145], %145 {strides = array<i32>} : memref<8x384xf32, #tpu.memory_space<vmem>>, vector<8x384xf32>,
    %c0_146 = arith.constant 0 : index
    %c0_147 = arith.constant 0 : index
    %147 = vector.load %arg9[%c0_146, %c0_147] : memref<8x384xf32, #tpu.memory_space<vmem>>, vector<8x384xf32>
    %cst_148 = arith.constant 0.000000e+00 : f32
    %148 = vector.broadcast %cst_148 : f32 to vector<8x384xf32>
    %149 = arith.cmpf oge, %147, %148 : vector<8x384xf32>
    %cst_149 = arith.constant 1.000000e-01 : f32
    %150 = vector.broadcast %cst_149 : f32 to vector<8x384xf32>
    %151 = arith.mulf %150, %147 : vector<8x384xf32>
    %152 = arith.select %149, %147, %151 : vector<8x384xi1>, vector<8x384xf32>
    %c0_150 = arith.constant 0 : index
    %c128_151 = arith.constant 128 : index
    %153 = vector.load %arg10[%c0_150, %c128_151] : memref<8x640xf32, #tpu.memory_space<vmem>>, vector<8x384xf32>
    tpu.vector_store %arg10[%c0_150, %c128_151], %152 {strides = array<i32>} : memref<8x640xf32, #tpu.memory_space<vmem>>, vector<8x384xf32>,
    %c0_i32_152 = arith.constant 0 : i32
    %154 = arith.cmpi eq, %arg1, %c0_i32_152 : i32
    %155 = arith.extui %154 : i1 to i32
    %c0_i32_153 = arith.constant 0 : i32
    %156 = arith.cmpi ne, %155, %c0_i32_153 : i32
    scf.if %156 {
      %cst_212 = arith.constant 0.000000e+00 : f32
      %207 = vector.broadcast %cst_212 : f32 to vector<8x128xf32>
      %c0_213 = arith.constant 0 : index
      %c128_214 = arith.constant 128 : index
      %208 = vector.load %arg10[%c0_213, %c128_214] : memref<8x640xf32, #tpu.memory_space<vmem>>, vector<8x128xf32>
      tpu.vector_store %arg10[%c0_213, %c128_214], %207 {strides = array<i32>} : memref<8x640xf32, #tpu.memory_space<vmem>>, vector<8x128xf32>,
    } else {
    }
    %c1_i32_154 = arith.constant 1 : i32
    %157 = arith.cmpi eq, %arg1, %c1_i32_154 : i32
    %158 = arith.extui %157 : i1 to i32
    %c0_i32_155 = arith.constant 0 : i32
    %159 = arith.cmpi ne, %158, %c0_i32_155 : i32
    scf.if %159 {
      %cst_212 = arith.constant 0.000000e+00 : f32
      %207 = vector.broadcast %cst_212 : f32 to vector<8x128xf32>
      %c0_213 = arith.constant 0 : index
      %c384 = arith.constant 384 : index
      %208 = vector.load %arg10[%c0_213, %c384] : memref<8x640xf32, #tpu.memory_space<vmem>>, vector<8x128xf32>
      tpu.vector_store %arg10[%c0_213, %c384], %207 {strides = array<i32>} : memref<8x640xf32, #tpu.memory_space<vmem>>, vector<8x128xf32>,
    } else {
    }
    %c0_156 = arith.constant 0 : index
    %c123 = arith.constant 123 : index
    %160 = vector.load %arg10[%c0_156, %c123] : memref<8x640xf32, #tpu.memory_space<vmem>>, vector<8x384xf32>
    %c0_157 = arith.constant 0 : index
    %c0_158 = arith.constant 0 : index
    %161 = vector.load %arg11[%c0_157, %c0_158] : memref<24x384xf32, #tpu.memory_space<vmem>>, vector<8x384xf32>
    tpu.vector_store %arg11[%c0_157, %c0_158], %160 {strides = array<i32>} : memref<24x384xf32, #tpu.memory_space<vmem>>, vector<8x384xf32>,
    %c0_159 = arith.constant 0 : index
    %c128_160 = arith.constant 128 : index
    %162 = vector.load %arg10[%c0_159, %c128_160] : memref<8x640xf32, #tpu.memory_space<vmem>>, vector<8x384xf32>
    %c8_161 = arith.constant 8 : index
    %c0_162 = arith.constant 0 : index
    %163 = vector.load %arg11[%c8_161, %c0_162] : memref<24x384xf32, #tpu.memory_space<vmem>>, vector<8x384xf32>
    tpu.vector_store %arg11[%c8_161, %c0_162], %162 {strides = array<i32>} : memref<24x384xf32, #tpu.memory_space<vmem>>, vector<8x384xf32>,
    %c0_163 = arith.constant 0 : index
    %c133 = arith.constant 133 : index
    %164 = vector.load %arg10[%c0_163, %c133] : memref<8x640xf32, #tpu.memory_space<vmem>>, vector<8x384xf32>
    %c16_164 = arith.constant 16 : index
    %c0_165 = arith.constant 0 : index
    %165 = vector.load %arg11[%c16_164, %c0_165] : memref<24x384xf32, #tpu.memory_space<vmem>>, vector<8x384xf32>
    tpu.vector_store %arg11[%c16_164, %c0_165], %164 {strides = array<i32>} : memref<24x384xf32, #tpu.memory_space<vmem>>, vector<8x384xf32>,
    %c2 = arith.constant 2 : index
    %c0_166 = arith.constant 0 : index
    %c0_167 = arith.constant 0 : index
    %166 = vector.load %arg4[%c2, %c0_166, %c0_167] : memref<3x8x24xf32, #tpu.memory_space<vmem>>, vector<1x8x24xf32>
    %167 = vector.shape_cast %166 : vector<1x8x24xf32> to vector<8x24xf32>
    %c0_168 = arith.constant 0 : index
    %c0_169 = arith.constant 0 : index
    %168 = vector.load %arg11[%c0_168, %c0_169] : memref<24x384xf32, #tpu.memory_space<vmem>>, vector<24x384xf32>
    %cst_170 = arith.constant dense<0.000000e+00> : vector<8x384xf32>
    %169 = tpu.matmul %167, %168, %cst_170 {dimension_numbers = #tpu.dot_dimension_numbers<[1], [0], [0], [1], [0, 0, 1, 1], [], []>} : vector<8x24xf32>, vector<24x384xf32>, vector<8x384xf32> -> vector<8x384xf32>
    %c2_171 = arith.constant 2 : index
    %c0_172 = arith.constant 0 : index
    %c0_173 = arith.constant 0 : index
    %170 = vector.load %arg5[%c2_171, %c0_172, %c0_173] : memref<3x8x1xf32, #tpu.memory_space<vmem>>, vector<1x8x1xf32>
    %171 = vector.shape_cast %170 : vector<1x8x1xf32> to vector<8x1xf32>
    %172 = vector.broadcast %171 : vector<8x1xf32> to vector<8x384xf32>
    %173 = arith.addf %169, %172 : vector<8x384xf32>
    %cst_174 = arith.constant 0.000000e+00 : f32
    %174 = vector.broadcast %cst_174 : f32 to vector<8x384xf32>
    %175 = arith.cmpf oge, %173, %174 : vector<8x384xf32>
    %cst_175 = arith.constant 1.000000e-01 : f32
    %176 = vector.broadcast %cst_175 : f32 to vector<8x384xf32>
    %177 = arith.mulf %176, %173 : vector<8x384xf32>
    %178 = arith.select %175, %173, %177 : vector<8x384xi1>, vector<8x384xf32>
    %c0_176 = arith.constant 0 : index
    %c128_177 = arith.constant 128 : index
    %179 = vector.load %arg10[%c0_176, %c128_177] : memref<8x640xf32, #tpu.memory_space<vmem>>, vector<8x384xf32>
    tpu.vector_store %arg10[%c0_176, %c128_177], %178 {strides = array<i32>} : memref<8x640xf32, #tpu.memory_space<vmem>>, vector<8x384xf32>,
    %c0_i32_178 = arith.constant 0 : i32
    %180 = arith.cmpi eq, %arg1, %c0_i32_178 : i32
    %181 = arith.extui %180 : i1 to i32
    %c0_i32_179 = arith.constant 0 : i32
    %182 = arith.cmpi ne, %181, %c0_i32_179 : i32
    scf.if %182 {
      %cst_212 = arith.constant 0.000000e+00 : f32
      %207 = vector.broadcast %cst_212 : f32 to vector<8x128xf32>
      %c0_213 = arith.constant 0 : index
      %c128_214 = arith.constant 128 : index
      %208 = vector.load %arg10[%c0_213, %c128_214] : memref<8x640xf32, #tpu.memory_space<vmem>>, vector<8x128xf32>
      tpu.vector_store %arg10[%c0_213, %c128_214], %207 {strides = array<i32>} : memref<8x640xf32, #tpu.memory_space<vmem>>, vector<8x128xf32>,
    } else {
    }
    %c1_i32_180 = arith.constant 1 : i32
    %183 = arith.cmpi eq, %arg1, %c1_i32_180 : i32
    %184 = arith.extui %183 : i1 to i32
    %c0_i32_181 = arith.constant 0 : i32
    %185 = arith.cmpi ne, %184, %c0_i32_181 : i32
    scf.if %185 {
      %cst_212 = arith.constant 0.000000e+00 : f32
      %207 = vector.broadcast %cst_212 : f32 to vector<8x128xf32>
      %c0_213 = arith.constant 0 : index
      %c384 = arith.constant 384 : index
      %208 = vector.load %arg10[%c0_213, %c384] : memref<8x640xf32, #tpu.memory_space<vmem>>, vector<8x128xf32>
      tpu.vector_store %arg10[%c0_213, %c384], %207 {strides = array<i32>} : memref<8x640xf32, #tpu.memory_space<vmem>>, vector<8x128xf32>,
    } else {
    }
    %c0_182 = arith.constant 0 : index
    %c127_183 = arith.constant 127 : index
    %186 = vector.load %arg10[%c0_182, %c127_183] : memref<8x640xf32, #tpu.memory_space<vmem>>, vector<8x384xf32>
    %c0_184 = arith.constant 0 : index
    %c0_185 = arith.constant 0 : index
    %187 = vector.load %arg11[%c0_184, %c0_185] : memref<24x384xf32, #tpu.memory_space<vmem>>, vector<8x384xf32>
    tpu.vector_store %arg11[%c0_184, %c0_185], %186 {strides = array<i32>} : memref<24x384xf32, #tpu.memory_space<vmem>>, vector<8x384xf32>,
    %c0_186 = arith.constant 0 : index
    %c128_187 = arith.constant 128 : index
    %188 = vector.load %arg10[%c0_186, %c128_187] : memref<8x640xf32, #tpu.memory_space<vmem>>, vector<8x384xf32>
    %c8_188 = arith.constant 8 : index
    %c0_189 = arith.constant 0 : index
    %189 = vector.load %arg11[%c8_188, %c0_189] : memref<24x384xf32, #tpu.memory_space<vmem>>, vector<8x384xf32>
    tpu.vector_store %arg11[%c8_188, %c0_189], %188 {strides = array<i32>} : memref<24x384xf32, #tpu.memory_space<vmem>>, vector<8x384xf32>,
    %c0_190 = arith.constant 0 : index
    %c129_191 = arith.constant 129 : index
    %190 = vector.load %arg10[%c0_190, %c129_191] : memref<8x640xf32, #tpu.memory_space<vmem>>, vector<8x384xf32>
    %c16_192 = arith.constant 16 : index
    %c0_193 = arith.constant 0 : index
    %191 = vector.load %arg11[%c16_192, %c0_193] : memref<24x384xf32, #tpu.memory_space<vmem>>, vector<8x384xf32>
    tpu.vector_store %arg11[%c16_192, %c0_193], %190 {strides = array<i32>} : memref<24x384xf32, #tpu.memory_space<vmem>>, vector<8x384xf32>,
    %c2_194 = arith.constant 2 : index
    %c0_195 = arith.constant 0 : index
    %c0_196 = arith.constant 0 : index
    %192 = vector.load %arg6[%c2_194, %c0_195, %c0_196] : memref<3x8x24xf32, #tpu.memory_space<vmem>>, vector<1x8x24xf32>
    %193 = vector.shape_cast %192 : vector<1x8x24xf32> to vector<8x24xf32>
    %c0_197 = arith.constant 0 : index
    %c0_198 = arith.constant 0 : index
    %194 = vector.load %arg11[%c0_197, %c0_198] : memref<24x384xf32, #tpu.memory_space<vmem>>, vector<24x384xf32>
    %cst_199 = arith.constant dense<0.000000e+00> : vector<8x384xf32>
    %195 = tpu.matmul %193, %194, %cst_199 {dimension_numbers = #tpu.dot_dimension_numbers<[1], [0], [0], [1], [0, 0, 1, 1], [], []>} : vector<8x24xf32>, vector<24x384xf32>, vector<8x384xf32> -> vector<8x384xf32>
    %c2_200 = arith.constant 2 : index
    %c0_201 = arith.constant 0 : index
    %c0_202 = arith.constant 0 : index
    %196 = vector.load %arg7[%c2_200, %c0_201, %c0_202] : memref<3x8x1xf32, #tpu.memory_space<vmem>>, vector<1x8x1xf32>
    %197 = vector.shape_cast %196 : vector<1x8x1xf32> to vector<8x1xf32>
    %198 = vector.broadcast %197 : vector<8x1xf32> to vector<8x384xf32>
    %199 = arith.addf %195, %198 : vector<8x384xf32>
    %c0_203 = arith.constant 0 : index
    %c0_204 = arith.constant 0 : index
    %200 = vector.load %arg9[%c0_203, %c0_204] : memref<8x384xf32, #tpu.memory_space<vmem>>, vector<8x384xf32>
    %201 = arith.addf %199, %200 : vector<8x384xf32>
    %c0_205 = arith.constant 0 : index
    %c0_206 = arith.constant 0 : index
    %202 = vector.load %arg9[%c0_205, %c0_206] : memref<8x384xf32, #tpu.memory_space<vmem>>, vector<8x384xf32>
    tpu.vector_store %arg9[%c0_205, %c0_206], %201 {strides = array<i32>} : memref<8x384xf32, #tpu.memory_space<vmem>>, vector<8x384xf32>,
    %c0_207 = arith.constant 0 : index
    %c128_208 = arith.constant 128 : index
    %203 = vector.load %arg9[%c0_207, %c128_208] : memref<8x384xf32, #tpu.memory_space<vmem>>, vector<8x128xf32>
    %c0_209 = arith.constant 0 : index
    %c0_210 = arith.constant 0 : index
    %c0_211 = arith.constant 0 : index
    %204 = vector.load %arg8[%c0_209, %c0_210, %c0_211] : memref<1x8x128xf32, #tpu.memory_space<vmem>>, vector<1x8x128xf32>
    %205 = vector.shape_cast %204 : vector<1x8x128xf32> to vector<8x128xf32>
    %206 = vector.shape_cast %203 : vector<8x128xf32> to vector<1x8x128xf32>
    tpu.vector_store %arg8[%c0_209, %c0_210, %c0_211], %206 {strides = array<i32>} : memref<1x8x128xf32, #tpu.memory_space<vmem>>, vector<1x8x128xf32>,
    return
  }
  func.func @transform_0(%arg0: i32, %arg1: i32) -> (i32, i32, i32) {
    %c0_i32 = arith.constant 0 : i32
    %c0_i32_0 = arith.constant 0 : i32
    return %arg0, %c0_i32, %arg1 : i32, i32, i32
  }
  func.func @transform_2(%arg0: i32, %arg1: i32) -> (i32, i32, i32) {
    %c0_i32 = arith.constant 0 : i32
    %c0_i32_0 = arith.constant 0 : i32
    %c0_i32_1 = arith.constant 0 : i32
    %c0_i32_2 = arith.constant 0 : i32
    return %c0_i32, %c0_i32_0, %c0_i32_1 : i32, i32, i32
  }
  func.func @transform_3(%arg0: i32, %arg1: i32) -> (i32, i32, i32) {
    %c0_i32 = arith.constant 0 : i32
    %c0_i32_0 = arith.constant 0 : i32
    %c0_i32_1 = arith.constant 0 : i32
    %c0_i32_2 = arith.constant 0 : i32
    return %c0_i32, %c0_i32_0, %c0_i32_1 : i32, i32, i32
  }
  func.func @transform_4(%arg0: i32, %arg1: i32) -> (i32, i32, i32) {
    %c0_i32 = arith.constant 0 : i32
    %c0_i32_0 = arith.constant 0 : i32
    %c0_i32_1 = arith.constant 0 : i32
    %c0_i32_2 = arith.constant 0 : i32
    return %c0_i32, %c0_i32_0, %c0_i32_1 : i32, i32, i32
  }
  func.func @transform_5(%arg0: i32, %arg1: i32) -> (i32, i32, i32) {
    %c0_i32 = arith.constant 0 : i32
    %c0_i32_0 = arith.constant 0 : i32
    %c0_i32_1 = arith.constant 0 : i32
    %c0_i32_2 = arith.constant 0 : i32
    return %c0_i32, %c0_i32_0, %c0_i32_1 : i32, i32, i32
  }
  func.func @transform_6(%arg0: i32, %arg1: i32) -> (i32, i32, i32) {
    %c0_i32 = arith.constant 0 : i32
    %c0_i32_0 = arith.constant 0 : i32
    return %arg0, %c0_i32, %arg1 : i32, i32, i32
  }
}

</mosaic_0001>

<bundles_post_ra>
// kernel: tpu_custom_call.1
= control target key start
LH: loop header
LB: loop body
LE: loop exit
PB: predicated region body
PF: predicated region fallthrough
CT: control target
= control target key end

     0   :  { %s2777_s0 = inlined_call_operand.vmem [shape: f32[2,8,256], index: 0, kind: input, shape index: {}]   ;;  %s2778_s1 = inlined_call_operand.hbm [shape: f32[2,8,256], index: 1, kind: input, shape index: {}]   ;;  %s2779_s2 = inlined_call_operand.vmem [shape: f32[3,8,24], index: 2, kind: input, shape index: {}]   ;;  %s2780_s3 = inlined_call_operand.vmem [shape: f32[3,8,1], index: 3, kind: input, shape index: {}]   ;;  %s2781_s4 = inlined_call_operand.hbm [shape: f32[3,8,24], index: 4, kind: input, shape index: {}]   ;;  %s2782_s5 = inlined_call_operand.vmem [shape: f32[3,8,1], index: 5, kind: input, shape index: {}]   ;;  %s2783_s6 = inlined_call_operand.hbm [shape: f32[2,8,256], index: 6, kind: output, shape index: {}]  }
   0x1   :  { %2791 = sst [smem:[#allocation27_spill]] %s2781_s4 }
   0x2   :  { %11 = vsyncpa [#allocation7], 0 }
   0x3   :  { %12 = vsyncpa [#allocation8], 0 }
   0x4   :  { %14 = vsyncpa [#allocation8 + $0x1], 0  ;;  %s2395_s21 = smov 0   ;;  %s2397_s22 = smov 0  }
   0x5   :  { %s2399_s23 = smov 0   ;;  %s2401_s24 = smov 0  }
   0x6   :  { %s2403_s25 = smov 0   ;;  %s2405_s26 = smov 0  }
   0x7   :  { %s2407_s27 = smov 0   ;;  %s2409_s28 = smov 0  }
   0x8 LB: > { %2792 = sst [smem:[#allocation20_spill]] %s2311_s23  ;;  %s1915_s29 = sadd.s32 4294967295, %s2331_s28   ;;  %s2331_s28 = sphi %s2409_s28, %s20_s28   ;;  %s2327_s27 = sphi %s2407_s27, %s2812_s27   ;;  %s2323_s26 = sphi %s2405_s26, %s2811_s26   ;;  %s2319_s25 = sphi %s2403_s25, %s2810_s25   ;;  %s2315_s24 = sphi %s2401_s24, %s2809_s24   ;;  %s2311_s23 = sphi %s2399_s23, %s2808_s23   ;;  %s2307_s22 = sphi %s2397_s22, %s2814_s22   ;;  %s2303_s21 = sphi %s2395_s21, %s2813_s21  }
   0x9   : > { %2793 = sst [smem:[#allocation21_spill]] %s2323_s26  ;;  %s1916_s30 = sadd.s32 4294967294, %s2331_s28  }
   0xa   : > { %2794 = sst [smem:[#allocation22_spill]] %s2327_s27  ;;  %s29_s7 = sadd.s32 1, %s2323_s26 }
   0xb   : > { %s32_s8 = sadd.s32 1, %s2327_s27  ;;  %p30_p0 = scmp.ge.s32.totalorder %s29_s7, 2 }
   0xc   : > { %s153_s9 = sadd.s32 1, %s2311_s23  ;;  %p163_p1 = scmp.ne.s32.totalorder %s2311_s23, %s2307_s22 }
   0xd   : > { %p164_p2 = scmp.eq.s32.totalorder %s1915_s29, 3  ;;  %s2816_s7 = smov (%p30_p0, %s29_s7), 0 }
   0xe   : > { %2795 = sst [smem:[#allocation23_spill]] %s2816_s7  ;;  %s2818_s8 = smov (!%p30_p0, %s32_s8), %s2327_s27 }
   0xf   : > { %s149_s10 = ssub.s32 %s2323_s26, %s2816_s7  ;;  %p2447_p3 = por %p164_p2, %p163_p1 }
  0x10   : > { %p34_p4 = scmp.ge.s32.totalorder %s2818_s8, 2  ;;  %p169_p5 = scmp.ne.s32.totalorder %s2307_s22, %s2303_s21 }
  0x11   : > { %p170_p6 = scmp.eq.s32.totalorder %s1916_s30, 3  ;;  %p1917_p7 = scmp.ge.s32.totalorder %s2331_s28, 1 }
  0x12   : > { %s2820_s8 = smov (%p34_p4, %s2818_s8), 0  ;;  %p177_p9 = scmp.lt.s32.totalorder %s2331_s28, 5 }
  0x13   : > { %2797 = sst [smem:[#allocation24_spill]] %s2820_s8  ;;  %p2456_p8 = por %p170_p6, %p169_p5 }
  0x14   : > { %s148_s13 = ssub.s32 %s2327_s27, %s2820_s8  ;;  %p2463_p10 = pnand %p1917_p7, %p177_p9 }
  0x15   : > { %s2798_s12 = scalar_select %p2456_p8, 1, 0 }
  0x16   : > { %s150_s14 = sor.u32 %s149_s10, %s148_s13  ;;  %p2467_p12 = scmp.eq.s32.totalorder %s1915_s29, 0 }
  0x17   : > { %2799 = sst [smem:[#allocation25_spill]] %s2798_s12  ;;  %p151_p11 = scmp.eq.s32.totalorder %s150_s14, 0 }
  0x18   : > { %p2054_p13 = pneg %p2463_p10  ;;  %s2333_s18 = smov [#allocation6]  }
  0x19   : > { %s2474_s17 = scalar_select %p151_p11, %s2311_s23, %s153_s9  }
  0x1a   : > { %s195_s19 = sshll.u32 %s2333_s18, 4  ;;  %p2478_p0 = pnand %p2467_p12, %p2054_p13  ;;  %s196_s19 = int_to_ptr.vmem [resolvable:$true] %s195_s19 }
  0x1b   : > { %2802 = sst [smem:[#allocation26_spill]] %s2474_s17  ;;  %s2172_s29 = scalar_lea.vmem %s196_s19, 384 }
  0x1c   : > { %p2163_p1 = pneg %p2478_p0  ;;  %p2173_p2 = scmp.ne.s32.totalorder %s196_s19, %s2172_s29 }
  0x1d   : > { %p2180_p6 = scmp.lt.s32.totalorder %s196_s19, %s196_s19  ;;  %p2181_p7 = scmp.lt.s32.totalorder %s2172_s29, %s2172_s29 }
  0x1e   : > { %p2175_p4 = pnand %p2173_p2, %p2163_p1 }
  0x1f   : > { %p2182_p9 = por %p2181_p7, %p2180_p6 }
  0x20   : > { %p2176_p5 = pneg %p2175_p4 }
  0x22   : > { %p2183_p11 = pnand %p2182_p9, %p2176_p5 }
  0x24   : > { %2186 = shalt.err (!%p2183_p11)
}
  0x25   : > { %s2334_s30 = smov 128   ;;  %s2335_s9 = smov 8  }
  0x26   : > { %s2804_s4 = sld [smem:[#allocation27_spill]] }
  0x28   : > { %225 = sbr.rel (%p2463_p10) target bundleno = 2183 (0x887), region = 40 }
  0x2c   : > { %2057 = dma.hbm_to_vmem [thread:$0]  (!%p2478_p0), %s2804_s4, 384, %s196_s19, [#allocation7], %s2334_s30, %s2334_s30, %s2335_s9  }
  0x2d   : > { %2290 = dma.done.wait (%p2467_p12), [#allocation7], 384  }
  0x2e   : > { %2292 = vsyncadd (%p2467_p12), [#allocation7], 4294966912  ;;  %s2784_s14 = sand.u32 1, %s2307_s22   ;;  %s1925_s18 = sshll.u32 %s2315_s24, 7  ;;  %v2336_v0 = vmov 0.0  }
  0x2f   : > { %s2499_s20 = sshll.u32 %s2784_s14, 3  ;;  %s1926_s29 = sadd.s32 4294967168, %s1925_s18  ;;  %307 = vst [vmem:[#allocation3 + $0x20] sm:$0xff] %v2336_v0  ;;  %308 = vst [vmem:[#allocation3] sm:$0xff] %v2336_v0 }
  0x30   : > { %p266_p10 = scmp.gt.s32.totalorder %s1926_s29, 0  ;;  %s2504_s15 = sshll.u32 %s2319_s25, 1 }
  0x31   : > { %s2337_s16 = smov [#allocation2]   ;;  %s1969_s30 = sadd.s32 128, %s1925_s18 }
  0x32   : > { %s2822_s29 = smov (!%p266_p10, %s1926_s29), 0  ;;  %s285_s19 = sshll.u32 %s2337_s16, 4  ;;  %s2506_s19 = int_to_ptr.vmem [resolvable:$true] %s285_s19 }
  0x33   : > { %s272_s9 = sshra.s32 %s2822_s29, 7  ;;  %p270_p12 = scmp.lt.s32.totalorder %s1969_s30, 128 }
  0x34   : > { %s275_s10 = sadd.s32 %s2504_s15, %s272_s9  ;;  %s2338_s7 = smov [#allocation2 + $0x10]  }
  0x35   : > { %s1929_s13 = sshll.u32 %s275_s10, 7  ;;  %s303_s27 = sshll.u32 %s2338_s7, 4  ;;  %s304_s27 = int_to_ptr.vmem [resolvable:$true] %s303_s27 }
  0x36   : > { %s277_s8 = scalar_lea.hbm %s2778_s1, %s1929_s13  ;;  %s2189_s12 = scalar_lea.hbm %s2778_s1, 512 }
  0x37   : > { %s2187_s26 = scalar_lea.hbm %s277_s8, 128  ;;  %p2190_p0 = scmp.lt.s32.totalorder %s277_s8, %s2778_s1 }
  0x38   : > { %p2188_p13 = scmp.ne.s32.totalorder %s277_s8, %s2187_s26  ;;  %p2191_p1 = scmp.lt.s32.totalorder %s2189_s12, %s2187_s26 }
  0x3a   : > { %p2192_p2 = por %p2191_p1, %p2190_p0 }
  0x3c   : > { %p2193_p4 = pnand %p2192_p2, %p2188_p13 }
  0x3e   : > { %2196 = shalt.err (!%p2193_p4)  }
  0x3f   : > { %s2197_s4 = scalar_lea.vmem %s2506_s19, 128  ;;  %s2201_s7 = scalar_lea.vmem %s2506_s19, 384 }
  0x40   : > { %p2198_p5 = scmp.ne.s32.totalorder %s2506_s19, %s2197_s4  ;;  %p2202_p6 = scmp.lt.s32.totalorder %s2506_s19, %s2506_s19 }
  0x41   : > { %p2203_p7 = scmp.lt.s32.totalorder %s2201_s7, %s2197_s4 }
  0x43   : > { %p2204_p9 = por %p2203_p7, %p2202_p6 }
  0x45   : > { %p2205_p11 = pnand %p2204_p9, %p2198_p5 }
  0x47   : > { %2208 = shalt.err (!%p2205_p11)  }
  0x48   : > { %288 = dma.hbm_to_vmem [thread:$0]  %s277_s8, 128, %s2506_s19, [#allocation5] }
  0x49   : > { %s2824_s30 = smov (!%p270_p12, %s1969_s30), 128  ;;  %p256_p10 = scmp.lt.s32.totalorder %s2319_s25, 1 }
  0x4a   : > { %s289_s23 = sshra.s32 %s2824_s30, 7  ;;  %p258_p13 = scmp.lt.s32.totalorder %s2315_s24, 1 }
  0x4b   : > { %s291_s26 = sadd.s32 %s2504_s15, %s289_s23 }
  0x4c   : > { %s1930_s17 = sshll.u32 %s291_s26, 7 }
  0x4d   : > { %s293_s9 = scalar_lea.hbm %s2778_s1, %s1930_s17 }
  0x4e   : > { %s2209_s10 = scalar_lea.hbm %s293_s9, 128  ;;  %p2212_p1 = scmp.lt.s32.totalorder %s293_s9, %s2778_s1 }
  0x4f   : > { %p2210_p0 = scmp.ne.s32.totalorder %s293_s9, %s2209_s10  ;;  %p2213_p2 = scmp.lt.s32.totalorder %s2189_s12, %s2209_s10 }
  0x51   : > { %p2214_p4 = por %p2213_p2, %p2212_p1 }
  0x53   : > { %p2215_p5 = pnand %p2214_p4, %p2210_p0 }
  0x55   : > { %2218 = shalt.err (!%p2215_p5)  }
  0x56   : > { %s2219_s8 = scalar_lea.vmem %s304_s27, 128  ;;  %p2224_p6 = scmp.lt.s32.totalorder %s304_s27, %s2506_s19 }
  0x57   : > { %p2220_p12 = scmp.ne.s32.totalorder %s304_s27, %s2219_s8  ;;  %p2225_p7 = scmp.lt.s32.totalorder %s2201_s7, %s2219_s8 }
  0x59   : > { %p2226_p9 = por %p2225_p7, %p2224_p6 }
  0x5b   : > { %p2227_p11 = pnand %p2226_p9, %p2220_p12 }
  0x5d   : > { %2230 = shalt.err (!%p2227_p11)  }
  0x5e   : > { %306 = dma.hbm_to_vmem [thread:$0]  %s293_s9, 128, %s304_s27, [#allocation5 + $0x1] }
  0x5f   : > { %s2826_s25 = smov (!%p256_p10, %s2319_s25), 1  ;;  %s255_s7 = scalar_lea.vmem [#allocation9], %s2499_s20 }
  0x60   : > { %s259_s12 = scalar_select %p258_p13, %s2315_s24, 1 }
  0x61   : > { %s1923_s30 = sshll.u32 %s2826_s25, 1 }
  0x62   : > { %s261_s18 = sadd.s32 %s1923_s30, %s259_s12 }
  0x63   : > { %s1924_s4 = sshll.u32 %s261_s18, 3 }
  0x64   : > { %s263_s19 = scalar_lea.vmem %s2777_s0, %s1924_s4 }
  0x65   : > { %v309_v1 = vld [vmem:[%s263_s19] sm:$0xff] }
  0x66   : > { %310 = vst [vmem:[#allocation2 + $0x8] sm:$0xff] %v309_v1 }
  0x67   : > { %2293 = dma.done.wait [#allocation5], 128 }
  0x68   : > { %2294 = vsyncadd [#allocation5], 4294967168 }
  0x69   : > { %2295 = dma.done.wait [#allocation5 + $0x1], 128 }
  0x6a   : > { %2296 = vsyncadd [#allocation5 + $0x1], 4294967168  ;;  %v317_v2 = vld [vmem:[#allocation2] sm:$0xff]  ;;  %v319_v4 = vld [vmem:[#allocation2 + $0x10] sm:$0xff]  ;;  %p1931_p10 = scmp.ne.s32.totalorder %s2315_s24, 0 }
  0x6b   : > { %vm320_vm0 = vcmp.ge.f32.partialorder %v317_v2, 0.0  ;;  %v323_v5 = vmul.f32 0.1, %v317_v2  ;;  %vm322_vm2 = vcmp.ge.f32.partialorder %v319_v4, 0.0  ;;  %v325_v7 = vmul.f32 0.1, %v319_v4 }
  0x6d   : > { %v318_v3 = vld [vmem:[#allocation2 + $0x8] sm:$0xff]  ;;  %v326_v8 = vsel %vm320_vm0, %v317_v2, %v323_v5  ;;  %v328_v10 = vsel %vm322_vm2, %v319_v4, %v325_v7  ;;  %335 = sbr.rel (%p1931_p10) target bundleno = 116 (0x74), region = 56 }
  0x6e   : > { %vm321_vm1 = vcmp.ge.f32.partialorder %v318_v3, 0.0  ;;  %v324_v6 = vmul.f32 0.1, %v318_v3  ;;  %329 = vst [vmem:[#allocation3 + $0x18] sm:$0xff] %v326_v8  ;;  %331 = vst [vmem:[#allocation3 + $0x10] sm:$0xff] %v328_v10 }
  0x70   : > { %v327_v9 = vsel %vm321_vm1, %v318_v3, %v324_v6 }
  0x71   : > { %330 = vst [vmem:[#allocation3 + $0x8] sm:$0xff] %v327_v9 }
  0x72   : > { %v2339_v11 = vmov 0.0  }
  0x73   : > { %336 = vst [vmem:[#allocation3 + $0x18] sm:$0xff] %v2339_v11 }
  0x74 PF: > { %p1932_p13 = scmp.ne.s32.totalorder %s2315_s24, 1 }
  0x76   : > { %340 = sbr.rel (%p1932_p13) target bundleno = 125 (0x7d), region = 60 }
  0x7b   : > { %v2340_v12 = vmov 0.0  }
  0x7c   : > { %341 = vst [vmem:[#allocation3 + $0x10] sm:$0xff] %v2340_v12 }
  0x7d PF: > { %v375_v13 = vld [vmem:[#allocation3 + $0x8] sm:$0xff]  ;;  %v374_v14 = vld [vmem:[#allocation3 + $0x18] sm:$0xff]  ;;  %1994 = vmatprep.subr.mxu1 %v2336_v0  ;;  %484 = vmatprep.mubr.f32.mxu0 %v2336_v0  ;;  %s2341_s25 = smov 127   ;;  %v377_v16 = vld [vmem:[#allocation3] sm:$0xff]  ;;  %vm2342_vm3 = vmmov 0   ;;  %v2343_v17 = vmov 0  }
  0x7e   : > { %384 = vrot.lane.b32.xlu0 %v375_v13, %s2341_s25  ;;  %382 = vrot.lane.b32.xlu1 %v374_v14, %s2341_s25  ;;  %s2344_s27 = smov 1   ;;  %v342_v18 = vld [vmem:[#allocation3 + $0x20] sm:$0xff]  ;;  %v410_v19 = vld [vmem:[%s2780_s3] sm:$0xff]  ;;  %vm390_vm4 = vcmask 1039360   ;;  %vm358_vm5 = vcmask 7168   ;;  %vm416_vm6 = vcmask 195584  }
  0x7f   : > { %2000 = vmatprep.mubr.msk.f32.mxu1 %vm2342_vm3, %v2336_v0  ;;  %2155 = vset.pattern.permute.xlu0 %v2343_v17  ;;  %v400_v32 = vld [vmem:[%s2779_s2] sm:$0xff] }
  0x82   : > { %388 = vrot.lane.b32.xlu1 %v377_v16, %s2341_s25 }
  0x83   : > { %v376_v15 = vld [vmem:[#allocation3 + $0x10] sm:$0xff] }
  0x84   : > { %386 = vrot.lane.b32.xlu0 %v376_v15, %s2341_s25 }
  0x86   : > { %354 = vrot.lane.b32.xlu1 %v375_v13, %s2344_s27 }
  0x88   : > { %352 = vrot.lane.b32.xlu0 %v374_v14, %s2344_s27 }
  0x8a   : > { %356 = vrot.lane.b32.xlu1 %v376_v15, %s2344_s27 }
  0x8c   : > { %350 = vrot.lane.b32.xlu0 %v342_v18, %s2344_s27 }
  0x90   : > { %413 = vperm.xlu0 %2155, %v410_v19  }
  0xf0   : > { %v385_v20 = vpop.permute.xlu0 %384  ;;  %v383_v21 = vpop.permute.xlu1 %382 }
  0xf1   : > { %v391_v22 = vsel %vm390_vm4, %v383_v21, %v385_v20 }
  0xf4   : > { %v389_v24 = vpop.permute.xlu1 %388 }
  0xf6   : > { %v387_v23 = vpop.permute.xlu0 %386 }
  0xf7   : > { %v392_v25 = vsel %vm390_vm4, %v385_v20, %v387_v23  ;;  %v393_v26 = vsel %vm390_vm4, %v387_v23, %v389_v24 }
  0xf8   : > { %446 = vmatprep.subr.mxu0 %v392_v25  ;;  %1995 = vmatpush3.msra.mxu1 %v393_v26  ;;  %v355_v27 = vpop.permute.xlu1 %354 }
  0xf9   : > { %447 = vmatpush1.msra.mxu0 %v391_v22  ;;  %1996 = vmatprep.subr.mxu1 %v2336_v0 }
  0xfa   : > { %v353_v28 = vpop.permute.xlu0 %352  ;;  %448 = vmatprep.subr.mxu0 %v375_v13  ;;  %1997 = vmatpush3.msra.mxu1 %v376_v15 }
  0xfb   : > { %v360_v29 = vsel %vm358_vm5, %v353_v28, %v355_v27  ;;  %449 = vmatpush1.msra.mxu0 %v374_v14  ;;  %1998 = vmatprep.subr.mxu1 %v2336_v0 }
  0xfc   : > { %450 = vmatprep.subr.mxu0 %v360_v29  ;;  %v357_v30 = vpop.permute.xlu1 %356 }
  0xfd   : > { %v361_v33 = vsel %vm358_vm5, %v355_v27, %v357_v30 }
  0xfe   : > { %v351_v31 = vpop.permute.xlu0 %350  ;;  %1999 = vmatpush3.msra.mxu1 %v361_v33 }
  0xff   : > { %v359_v34 = vsel %vm358_vm5, %v351_v31, %v353_v28  ;;  %2001 = vmatmul.mubr.msk.f32.vlgmr.msra.gmra.mxu1 %vm416_vm6, %v400_v32 }
 0x100   : > { %451 = vmatpush1.msra.mxu0 %v359_v34 }
 0x101   : > { %1933 = vmatmul.mubr.msk.f32.vlgmr.msra.gmra.mxu0 %vm416_vm6, %v400_v32 }
 0x10b   : > { %v414_v35 = vpop.permute.xlu0 %413 }
 0x1bf   : > { %v557_v37 = vpop.f32.mrf.mxu1 }
 0x1c0   : > { %v558_v39 = vadd.f32 %v557_v37, %v414_v35 }
 0x1c1   : > { %v486_v36 = vpop.f32.mrf.mxu0  ;;  %v2002_v41 = vpop.f32.mrf.mxu1 }
 0x1c2   : > { %v487_v38 = vadd.f32 %v486_v36, %v414_v35  ;;  %vm563_vm8 = vcmp.ge.f32.partialorder %v558_v39, 0.0  ;;  %v566_v43 = vmul.f32 0.1, %v558_v39 }
 0x1c3   : > { %v488_v40 = vpop.f32.mrf.mxu0 }
 0x1c4   : > { %vm561_vm7 = vcmp.ge.f32.partialorder %v487_v38, 0.0  ;;  %v564_v42 = vmul.f32 0.1, %v487_v38  ;;  %v489_v44 = vadd.f32 %v488_v40, %v414_v35  ;;  %v569_v46 = vsel %vm563_vm8, %v558_v39, %v566_v43 }
 0x1c5   : > { %572 = vst [vmem:[#allocation3 + $0x10] sm:$0xff] %v569_v46  ;;  %575 = sbr.rel (%p1931_p10) target bundleno = 460 (0x1cc), region = 64 }
 0x1c6   : > { %v567_v45 = vsel %vm561_vm7, %v487_v38, %v564_v42  ;;  %vm562_vm9 = vcmp.ge.f32.partialorder %v489_v44, 0.0  ;;  %v565_v47 = vmul.f32 0.1, %v489_v44 }
 0x1c7   : > { %570 = vst [vmem:[#allocation3 + $0x18] sm:$0xff] %v567_v45 }
 0x1c8   : > { %v568_v48 = vsel %vm562_vm9, %v489_v44, %v565_v47 }
 0x1c9   : > { %571 = vst [vmem:[#allocation3 + $0x8] sm:$0xff] %v568_v48 }
 0x1ca   : > { %v2345_v49 = vmov 0.0  }
 0x1cb   : > { %576 = vst [vmem:[#allocation3 + $0x18] sm:$0xff] %v2345_v49 }
 0x1cc PF: > { %579 = sbr.rel (%p1932_p13) target bundleno = 467 (0x1d3), region = 68 }
 0x1d1   : > { %v2346_v50 = vmov 0.0  }
 0x1d2   : > { %580 = vst [vmem:[#allocation3 + $0x10] sm:$0xff] %v2346_v50 }
 0x1d3 PF: > { %2003 = vmatprep.subr.mxu1 %v2336_v0  ;;  %720 = vmatprep.mubr.f32.mxu0 %v2336_v0  ;;  %v615_v54 = vld [vmem:[#allocation3] sm:$0xff]  ;;  %v647_v56 = vld [vmem:[%s2782_s5] sm:$0xff]  ;;  %v799_v13 = vld [vmem:[#allocation2 + $0x10] sm:$0xff] }
 0x1d4   : > { %v613_v51 = vld [vmem:[#allocation3 + $0x8] sm:$0xff]  ;;  %v612_v52 = vld [vmem:[#allocation3 + $0x18] sm:$0xff]  ;;  %2009 = vmatprep.mubr.msk.f32.mxu1 %vm2342_vm3, %v2336_v0  ;;  %2156 = vset.pattern.permute.xlu0 %v2343_v17  ;;  %v581_v55 = vld [vmem:[#allocation3 + $0x20] sm:$0xff] }
 0x1d5   : > { %622 = vrot.lane.b32.xlu0 %v613_v51, %s2341_s25  ;;  %620 = vrot.lane.b32.xlu1 %v612_v52, %s2341_s25  ;;  %v637_v6 = vld [vmem:[#allocation6] sm:$0xff]  ;;  %v798_v22 = vld [vmem:[#allocation2 + $0x8] sm:$0xff] }
 0x1d6   : > { %v797_v12 = vld [vmem:[#allocation2] sm:$0xff] }
 0x1d9   : > { %v614_v53 = vld [vmem:[#allocation3 + $0x10] sm:$0xff]  ;;  %626 = vrot.lane.b32.xlu1 %v615_v54, %s2341_s25 }
 0x1da   : > { %624 = vrot.lane.b32.xlu0 %v614_v53, %s2341_s25 }
 0x1dd   : > { %593 = vrot.lane.b32.xlu1 %v613_v51, %s2344_s27 }
 0x1de   : > { %591 = vrot.lane.b32.xlu0 %v612_v52, %s2344_s27 }
 0x1e1   : > { %595 = vrot.lane.b32.xlu1 %v614_v53, %s2344_s27 }
 0x1e2   : > { %589 = vrot.lane.b32.xlu0 %v581_v55, %s2344_s27 }
 0x1e6   : > { %650 = vperm.xlu0 %2156, %v647_v56  }
 0x247   : > { %v623_v57 = vpop.permute.xlu0 %622  ;;  %v621_v58 = vpop.permute.xlu1 %620 }
 0x248   : > { %v628_v59 = vsel %vm390_vm4, %v621_v58, %v623_v57 }
 0x24b   : > { %v627_v61 = vpop.permute.xlu1 %626 }
 0x24c   : > { %v625_v60 = vpop.permute.xlu0 %624 }
 0x24d   : > { %v629_v62 = vsel %vm390_vm4, %v623_v57, %v625_v60  ;;  %v630_v63 = vsel %vm390_vm4, %v625_v60, %v627_v61 }
 0x24e   : > { %682 = vmatprep.subr.mxu0 %v629_v62  ;;  %2004 = vmatpush3.msra.mxu1 %v630_v63 }
 0x24f   : > { %683 = vmatpush1.msra.mxu0 %v628_v59  ;;  %2005 = vmatprep.subr.mxu1 %v2336_v0  ;;  %v594_v1 = vpop.permute.xlu1 %593 }
 0x250   : > { %v592_v2 = vpop.permute.xlu0 %591  ;;  %684 = vmatprep.subr.mxu0 %v613_v51  ;;  %2006 = vmatpush3.msra.mxu1 %v614_v53 }
 0x251   : > { %v598_v3 = vsel %vm358_vm5, %v592_v2, %v594_v1  ;;  %685 = vmatpush1.msra.mxu0 %v612_v52  ;;  %2007 = vmatprep.subr.mxu1 %v2336_v0 }
 0x252   : > { %686 = vmatprep.subr.mxu0 %v598_v3 }
 0x253   : > { %v596_v4 = vpop.permute.xlu1 %595 }
 0x254   : > { %v590_v5 = vpop.permute.xlu0 %589  ;;  %v599_v7 = vsel %vm358_vm5, %v594_v1, %v596_v4 }
 0x255   : > { %v597_v8 = vsel %vm358_vm5, %v590_v5, %v592_v2  ;;  %2008 = vmatpush3.msra.mxu1 %v599_v7 }
 0x256   : > { %687 = vmatpush1.msra.mxu0 %v597_v8  ;;  %2010 = vmatmul.mubr.msk.f32.vlgmr.msra.gmra.mxu1 %vm416_vm6, %v637_v6 }
 0x257   : > { %1937 = vmatmul.mubr.msk.f32.vlgmr.msra.gmra.mxu0 %vm416_vm6, %v637_v6 }
 0x261   : > { %v651_v9 = vpop.permute.xlu0 %650 }
 0x316   : > { %v793_v11 = vpop.f32.mrf.mxu1 }
 0x317   : > { %v722_v10 = vpop.f32.mrf.mxu0  ;;  %v794_v15 = vadd.f32 %v793_v11, %v651_v9 }
 0x318   : > { %v723_v14 = vadd.f32 %v722_v10, %v651_v9  ;;  %v2011_v18 = vpop.f32.mrf.mxu1 }
 0x319   : > { %v724_v16 = vpop.f32.mrf.mxu0  ;;  %v802_v20 = vadd.f32 %v799_v13, %v794_v15 }
 0x31a   : > { %v800_v19 = vadd.f32 %v797_v12, %v723_v14  ;;  %v725_v21 = vadd.f32 %v724_v16, %v651_v9 }
 0x31b   : > { %805 = vst [vmem:[#allocation2 + $0x10] sm:$0xff] %v802_v20  ;;  %vm811_vm11 = vcmp.ge.f32.partialorder %v802_v20, 0.0  ;;  %v814_v24 = vmul.f32 0.1, %v802_v20 }
 0x31c   : > { %803 = vst [vmem:[#allocation2] sm:$0xff] %v800_v19  ;;  %vm809_vm10 = vcmp.ge.f32.partialorder %v800_v19, 0.0  ;;  %v812_v23 = vmul.f32 0.1, %v800_v19  ;;  %v801_v25 = vadd.f32 %v798_v22, %v725_v21 }
 0x31d   : > { %v817_v27 = vsel %vm811_vm11, %v802_v20, %v814_v24  ;;  %823 = sbr.rel (%p1931_p10) target bundleno = 804 (0x324), region = 72 }
 0x31e   : > { %v815_v26 = vsel %vm809_vm10, %v800_v19, %v812_v23  ;;  %820 = vst [vmem:[#allocation3 + $0x10] sm:$0xff] %v817_v27  ;;  %804 = vst [vmem:[#allocation2 + $0x8] sm:$0xff] %v801_v25  ;;  %vm810_vm12 = vcmp.ge.f32.partialorder %v801_v25, 0.0  ;;  %v813_v28 = vmul.f32 0.1, %v801_v25 }
 0x31f   : > { %818 = vst [vmem:[#allocation3 + $0x18] sm:$0xff] %v815_v26 }
 0x320   : > { %v816_v29 = vsel %vm810_vm12, %v801_v25, %v813_v28 }
 0x321   : > { %819 = vst [vmem:[#allocation3 + $0x8] sm:$0xff] %v816_v29 }
 0x322   : > { %v2347_v30 = vmov 0.0  }
 0x323   : > { %824 = vst [vmem:[#allocation3 + $0x18] sm:$0xff] %v2347_v30 }
 0x324 PF: > { %827 = sbr.rel (%p1932_p13) target bundleno = 811 (0x32b), region = 76 }
 0x329   : > { %v2348_v31 = vmov 0.0  }
 0x32a   : > { %828 = vst [vmem:[#allocation3 + $0x10] sm:$0xff] %v2348_v31 }
 0x32b PF: > { %2012 = vmatprep.subr.mxu1 %v2336_v0  ;;  %972 = vmatprep.mubr.f32.mxu0 %v2336_v0  ;;  %s2349_s16 = smov 125   ;;  %v864_v35 = vld [vmem:[#allocation3] sm:$0xff]  ;;  %s2350_s8 = smov 3   ;;  %v1942_v37 = vld [vmem:[%s2780_s3 + $0x8] sm:$0xff]  ;;  %vm877_vm13 = vcmask 1022976   ;;  %vm845_vm14 = vcmask 23552  }
 0x32c   : > { %v862_v32 = vld [vmem:[#allocation3 + $0x8] sm:$0xff]  ;;  %v861_v33 = vld [vmem:[#allocation3 + $0x18] sm:$0xff]  ;;  %2018 = vmatprep.mubr.msk.f32.mxu1 %vm2342_vm3, %v2336_v0  ;;  %2157 = vset.pattern.permute.xlu0 %v2343_v17  ;;  %v829_v36 = vld [vmem:[#allocation3 + $0x20] sm:$0xff] }
 0x32d   : > { %871 = vrot.lane.b32.xlu0 %v862_v32, %s2349_s16  ;;  %869 = vrot.lane.b32.xlu1 %v861_v33, %s2349_s16  ;;  %v1941_v50 = vld [vmem:[%s2779_s2 + $0x8] sm:$0xff] }
 0x331   : > { %v863_v34 = vld [vmem:[#allocation3 + $0x10] sm:$0xff]  ;;  %875 = vrot.lane.b32.xlu1 %v864_v35, %s2349_s16 }
 0x332   : > { %873 = vrot.lane.b32.xlu0 %v863_v34, %s2349_s16 }
 0x335   : > { %841 = vrot.lane.b32.xlu1 %v862_v32, %s2350_s8 }
 0x336   : > { %839 = vrot.lane.b32.xlu0 %v861_v33, %s2350_s8 }
 0x339   : > { %843 = vrot.lane.b32.xlu1 %v863_v34, %s2350_s8 }
 0x33a   : > { %837 = vrot.lane.b32.xlu0 %v829_v36, %s2350_s8 }
 0x33e   : > { %902 = vperm.xlu0 %2157, %v1942_v37  }
 0x39f   : > { %v872_v38 = vpop.permute.xlu0 %871  ;;  %v870_v39 = vpop.permute.xlu1 %869 }
 0x3a0   : > { %v878_v40 = vsel %vm877_vm13, %v870_v39, %v872_v38 }
 0x3a3   : > { %v876_v42 = vpop.permute.xlu1 %875 }
 0x3a4   : > { %v874_v41 = vpop.permute.xlu0 %873 }
 0x3a5   : > { %v879_v43 = vsel %vm877_vm13, %v872_v38, %v874_v41  ;;  %v880_v44 = vsel %vm877_vm13, %v874_v41, %v876_v42 }
 0x3a6   : > { %934 = vmatprep.subr.mxu0 %v879_v43  ;;  %2013 = vmatpush3.msra.mxu1 %v880_v44 }
 0x3a7   : > { %935 = vmatpush1.msra.mxu0 %v878_v40  ;;  %2014 = vmatprep.subr.mxu1 %v2336_v0  ;;  %v842_v45 = vpop.permute.xlu1 %841 }
 0x3a8   : > { %v840_v46 = vpop.permute.xlu0 %839  ;;  %936 = vmatprep.subr.mxu0 %v862_v32  ;;  %2015 = vmatpush3.msra.mxu1 %v863_v34 }
 0x3a9   : > { %v847_v47 = vsel %vm845_vm14, %v840_v46, %v842_v45  ;;  %937 = vmatpush1.msra.mxu0 %v861_v33  ;;  %2016 = vmatprep.subr.mxu1 %v2336_v0 }
 0x3aa   : > { %938 = vmatprep.subr.mxu0 %v847_v47 }
 0x3ab   : > { %v844_v48 = vpop.permute.xlu1 %843 }
 0x3ac   : > { %v838_v49 = vpop.permute.xlu0 %837  ;;  %v848_v51 = vsel %vm845_vm14, %v842_v45, %v844_v48 }
 0x3ad   : > { %v846_v52 = vsel %vm845_vm14, %v838_v49, %v840_v46  ;;  %2017 = vmatpush3.msra.mxu1 %v848_v51 }
 0x3ae   : > { %939 = vmatpush1.msra.mxu0 %v846_v52  ;;  %2019 = vmatmul.mubr.msk.f32.vlgmr.msra.gmra.mxu1 %vm416_vm6, %v1941_v50 }
 0x3af   : > { %1943 = vmatmul.mubr.msk.f32.vlgmr.msra.gmra.mxu0 %vm416_vm6, %v1941_v50 }
 0x3b9   : > { %v903_v53 = vpop.permute.xlu0 %902 }
 0x46e   : > { %v1045_v55 = vpop.f32.mrf.mxu1 }
 0x46f   : > { %v974_v54 = vpop.f32.mrf.mxu0  ;;  %v1046_v57 = vadd.f32 %v1045_v55, %v903_v53 }
 0x470   : > { %v975_v56 = vadd.f32 %v974_v54, %v903_v53  ;;  %v2020_v59 = vpop.f32.mrf.mxu1 }
 0x471   : > { %v976_v58 = vpop.f32.mrf.mxu0  ;;  %vm1051_vm0 = vcmp.ge.f32.partialorder %v1046_v57, 0.0  ;;  %v1054_v61 = vmul.f32 0.1, %v1046_v57 }
 0x472   : > { %vm1049_vm15 = vcmp.ge.f32.partialorder %v975_v56, 0.0  ;;  %v1052_v60 = vmul.f32 0.1, %v975_v56  ;;  %v977_v62 = vadd.f32 %v976_v58, %v903_v53 }
 0x473   : > { %v1057_v1 = vsel %vm1051_vm0, %v1046_v57, %v1054_v61  ;;  %1063 = sbr.rel (%p1931_p10) target bundleno = 1146 (0x47a), region = 80 }
 0x474   : > { %v1055_v63 = vsel %vm1049_vm15, %v975_v56, %v1052_v60  ;;  %1060 = vst [vmem:[#allocation3 + $0x10] sm:$0xff] %v1057_v1  ;;  %vm1050_vm1 = vcmp.ge.f32.partialorder %v977_v62, 0.0  ;;  %v1053_v2 = vmul.f32 0.1, %v977_v62 }
 0x475   : > { %1058 = vst [vmem:[#allocation3 + $0x18] sm:$0xff] %v1055_v63 }
 0x476   : > { %v1056_v3 = vsel %vm1050_vm1, %v977_v62, %v1053_v2 }
 0x477   : > { %1059 = vst [vmem:[#allocation3 + $0x8] sm:$0xff] %v1056_v3 }
 0x478   : > { %v2351_v4 = vmov 0.0  }
 0x479   : > { %1064 = vst [vmem:[#allocation3 + $0x18] sm:$0xff] %v2351_v4 }
 0x47a PF: > { %1067 = sbr.rel (%p1932_p13) target bundleno = 1153 (0x481), region = 84 }
 0x47f   : > { %v2352_v5 = vmov 0.0  }
 0x480   : > { %1068 = vst [vmem:[#allocation3 + $0x10] sm:$0xff] %v2352_v5 }
 0x481 PF: > { %2021 = vmatprep.subr.mxu1 %v2336_v0  ;;  %1210 = vmatprep.mubr.f32.mxu0 %v2336_v0  ;;  %v1103_v9 = vld [vmem:[#allocation3] sm:$0xff]  ;;  %v1947_v11 = vld [vmem:[%s2782_s5 + $0x8] sm:$0xff]  ;;  %v1287_v31 = vld [vmem:[#allocation2] sm:$0xff] }
 0x482   : > { %v1101_v6 = vld [vmem:[#allocation3 + $0x8] sm:$0xff]  ;;  %v1100_v7 = vld [vmem:[#allocation3 + $0x18] sm:$0xff]  ;;  %2027 = vmatprep.mubr.msk.f32.mxu1 %vm2342_vm3, %v2336_v0  ;;  %2158 = vset.pattern.permute.xlu0 %v2343_v17  ;;  %v1069_v10 = vld [vmem:[#allocation3 + $0x20] sm:$0xff] }
 0x483   : > { %1110 = vrot.lane.b32.xlu0 %v1101_v6, %s2341_s25  ;;  %1108 = vrot.lane.b32.xlu1 %v1100_v7, %s2341_s25  ;;  %v1126_v25 = vld [vmem:[#allocation6 + $0x8] sm:$0xff]  ;;  %v1289_v32 = vld [vmem:[#allocation2 + $0x10] sm:$0xff] }
 0x484   : > { %v1288_v40 = vld [vmem:[#allocation2 + $0x8] sm:$0xff] }
 0x487   : > { %v1102_v8 = vld [vmem:[#allocation3 + $0x10] sm:$0xff]  ;;  %1114 = vrot.lane.b32.xlu1 %v1103_v9, %s2341_s25 }
 0x488   : > { %1112 = vrot.lane.b32.xlu0 %v1102_v8, %s2341_s25 }
 0x48b   : > { %1081 = vrot.lane.b32.xlu1 %v1101_v6, %s2344_s27 }
 0x48c   : > { %1079 = vrot.lane.b32.xlu0 %v1100_v7, %s2344_s27 }
 0x48f   : > { %1083 = vrot.lane.b32.xlu1 %v1102_v8, %s2344_s27 }
 0x490   : > { %1077 = vrot.lane.b32.xlu0 %v1069_v10, %s2344_s27 }
 0x494   : > { %1140 = vperm.xlu0 %2158, %v1947_v11  }
 0x4f5   : > { %v1111_v12 = vpop.permute.xlu0 %1110  ;;  %v1109_v13 = vpop.permute.xlu1 %1108 }
 0x4f6   : > { %v1116_v14 = vsel %vm390_vm4, %v1109_v13, %v1111_v12 }
 0x4f9   : > { %v1115_v16 = vpop.permute.xlu1 %1114 }
 0x4fa   : > { %v1113_v15 = vpop.permute.xlu0 %1112 }
 0x4fb   : > { %v1117_v18 = vsel %vm390_vm4, %v1111_v12, %v1113_v15  ;;  %v1118_v19 = vsel %vm390_vm4, %v1113_v15, %v1115_v16 }
 0x4fc   : > { %1172 = vmatprep.subr.mxu0 %v1117_v18  ;;  %2022 = vmatpush3.msra.mxu1 %v1118_v19 }
 0x4fd   : > { %1173 = vmatpush1.msra.mxu0 %v1116_v14  ;;  %2023 = vmatprep.subr.mxu1 %v2336_v0  ;;  %v1082_v20 = vpop.permute.xlu1 %1081 }
 0x4fe   : > { %v1080_v21 = vpop.permute.xlu0 %1079  ;;  %1174 = vmatprep.subr.mxu0 %v1101_v6  ;;  %2024 = vmatpush3.msra.mxu1 %v1102_v8 }
 0x4ff   : > { %v1086_v22 = vsel %vm358_vm5, %v1080_v21, %v1082_v20  ;;  %1175 = vmatpush1.msra.mxu0 %v1100_v7  ;;  %2025 = vmatprep.subr.mxu1 %v2336_v0 }
 0x500   : > { %1176 = vmatprep.subr.mxu0 %v1086_v22 }
 0x501   : > { %v1084_v23 = vpop.permute.xlu1 %1083 }
 0x502   : > { %v1078_v24 = vpop.permute.xlu0 %1077  ;;  %v1087_v26 = vsel %vm358_vm5, %v1082_v20, %v1084_v23 }
 0x503   : > { %v1085_v27 = vsel %vm358_vm5, %v1078_v24, %v1080_v21  ;;  %2026 = vmatpush3.msra.mxu1 %v1087_v26 }
 0x504   : > { %1177 = vmatpush1.msra.mxu0 %v1085_v27  ;;  %2028 = vmatmul.mubr.msk.f32.vlgmr.msra.gmra.mxu1 %vm416_vm6, %v1126_v25 }
 0x505   : > { %1948 = vmatmul.mubr.msk.f32.vlgmr.msra.gmra.mxu0 %vm416_vm6, %v1126_v25 }
 0x50f   : > { %v1141_v28 = vpop.permute.xlu0 %1140 }
 0x5c4   : > { %v1283_v30 = vpop.f32.mrf.mxu1 }
 0x5c5   : > { %v1212_v29 = vpop.f32.mrf.mxu0  ;;  %v1284_v34 = vadd.f32 %v1283_v30, %v1141_v28 }
 0x5c6   : > { %v1213_v33 = vadd.f32 %v1212_v29, %v1141_v28  ;;  %v2029_v36 = vpop.f32.mrf.mxu1 }
 0x5c7   : > { %v1214_v35 = vpop.f32.mrf.mxu0  ;;  %v1292_v38 = vadd.f32 %v1289_v32, %v1284_v34 }
 0x5c8   : > { %v1290_v37 = vadd.f32 %v1287_v31, %v1213_v33  ;;  %v1215_v39 = vadd.f32 %v1214_v35, %v1141_v28 }
 0x5c9   : > { %1295 = vst [vmem:[#allocation2 + $0x10] sm:$0xff] %v1292_v38  ;;  %vm1301_vm7 = vcmp.ge.f32.partialorder %v1292_v38, 0.0  ;;  %v1304_v42 = vmul.f32 0.1, %v1292_v38 }
 0x5ca   : > { %1293 = vst [vmem:[#allocation2] sm:$0xff] %v1290_v37  ;;  %vm1299_vm2 = vcmp.ge.f32.partialorder %v1290_v37, 0.0  ;;  %v1302_v41 = vmul.f32 0.1, %v1290_v37  ;;  %v1291_v43 = vadd.f32 %v1288_v40, %v1215_v39 }
 0x5cb   : > { %v1307_v45 = vsel %vm1301_vm7, %v1292_v38, %v1304_v42  ;;  %1313 = sbr.rel (%p1931_p10) target bundleno = 1490 (0x5d2), region = 88 }
 0x5cc   : > { %v1305_v44 = vsel %vm1299_vm2, %v1290_v37, %v1302_v41  ;;  %1310 = vst [vmem:[#allocation3 + $0x10] sm:$0xff] %v1307_v45  ;;  %1294 = vst [vmem:[#allocation2 + $0x8] sm:$0xff] %v1291_v43  ;;  %vm1300_vm8 = vcmp.ge.f32.partialorder %v1291_v43, 0.0  ;;  %v1303_v46 = vmul.f32 0.1, %v1291_v43 }
 0x5cd   : > { %1308 = vst [vmem:[#allocation3 + $0x18] sm:$0xff] %v1305_v44 }
 0x5ce   : > { %v1306_v47 = vsel %vm1300_vm8, %v1291_v43, %v1303_v46 }
 0x5cf   : > { %1309 = vst [vmem:[#allocation3 + $0x8] sm:$0xff] %v1306_v47 }
 0x5d0   : > { %v2353_v48 = vmov 0.0  }
 0x5d1   : > { %1314 = vst [vmem:[#allocation3 + $0x18] sm:$0xff] %v2353_v48 }
 0x5d2 PF: > { %1317 = sbr.rel (%p1932_p13) target bundleno = 1497 (0x5d9), region = 92 }
 0x5d7   : > { %v2354_v49 = vmov 0.0  }
 0x5d8   : > { %1318 = vst [vmem:[#allocation3 + $0x10] sm:$0xff] %v2354_v49 }
 0x5d9 PF: > { %2030 = vmatprep.subr.mxu1 %v2336_v0  ;;  %1462 = vmatprep.mubr.f32.mxu0 %v2336_v0  ;;  %s2355_s19 = smov 123   ;;  %v1354_v53 = vld [vmem:[#allocation3] sm:$0xff]  ;;  %s2356_s17 = smov 5   ;;  %v1953_v55 = vld [vmem:[%s2780_s3 + $0x10] sm:$0xff]  ;;  %vm1367_vm9 = vcmask 1006592   ;;  %vm1335_vm10 = vcmask 39936  }
 0x5da   : > { %v1352_v50 = vld [vmem:[#allocation3 + $0x8] sm:$0xff]  ;;  %v1351_v51 = vld [vmem:[#allocation3 + $0x18] sm:$0xff]  ;;  %2036 = vmatprep.mubr.msk.f32.mxu1 %vm2342_vm3, %v2336_v0  ;;  %2159 = vset.pattern.permute.xlu0 %v2343_v17  ;;  %v1319_v54 = vld [vmem:[#allocation3 + $0x20] sm:$0xff] }
 0x5db   : > { %1361 = vrot.lane.b32.xlu0 %v1352_v50, %s2355_s19  ;;  %1359 = vrot.lane.b32.xlu1 %v1351_v51, %s2355_s19  ;;  %v1952_v5 = vld [vmem:[%s2779_s2 + $0x10] sm:$0xff] }
 0x5df   : > { %v1353_v52 = vld [vmem:[#allocation3 + $0x10] sm:$0xff]  ;;  %1365 = vrot.lane.b32.xlu1 %v1354_v53, %s2355_s19 }
 0x5e0   : > { %1363 = vrot.lane.b32.xlu0 %v1353_v52, %s2355_s19 }
 0x5e3   : > { %1331 = vrot.lane.b32.xlu1 %v1352_v50, %s2356_s17 }
 0x5e4   : > { %1329 = vrot.lane.b32.xlu0 %v1351_v51, %s2356_s17 }
 0x5e7   : > { %1333 = vrot.lane.b32.xlu1 %v1353_v52, %s2356_s17 }
 0x5e8   : > { %1327 = vrot.lane.b32.xlu0 %v1319_v54, %s2356_s17 }
 0x5ec   : > { %1392 = vperm.xlu0 %2159, %v1953_v55  }
 0x64d   : > { %v1362_v56 = vpop.permute.xlu0 %1361  ;;  %v1360_v57 = vpop.permute.xlu1 %1359 }
 0x64e   : > { %v1368_v58 = vsel %vm1367_vm9, %v1360_v57, %v1362_v56 }
 0x651   : > { %v1366_v60 = vpop.permute.xlu1 %1365 }
 0x652   : > { %v1364_v59 = vpop.permute.xlu0 %1363 }
 0x653   : > { %v1369_v61 = vsel %vm1367_vm9, %v1362_v56, %v1364_v59  ;;  %v1370_v62 = vsel %vm1367_vm9, %v1364_v59, %v1366_v60 }
 0x654   : > { %1424 = vmatprep.subr.mxu0 %v1369_v61  ;;  %2031 = vmatpush3.msra.mxu1 %v1370_v62 }
 0x655   : > { %1425 = vmatpush1.msra.mxu0 %v1368_v58  ;;  %2032 = vmatprep.subr.mxu1 %v2336_v0  ;;  %v1332_v63 = vpop.permute.xlu1 %1331 }
 0x656   : > { %v1330_v1 = vpop.permute.xlu0 %1329  ;;  %1426 = vmatprep.subr.mxu0 %v1352_v50  ;;  %2033 = vmatpush3.msra.mxu1 %v1353_v52 }
 0x657   : > { %v1337_v2 = vsel %vm1335_vm10, %v1330_v1, %v1332_v63  ;;  %1427 = vmatpush1.msra.mxu0 %v1351_v51  ;;  %2034 = vmatprep.subr.mxu1 %v2336_v0 }
 0x658   : > { %1428 = vmatprep.subr.mxu0 %v1337_v2 }
 0x659   : > { %v1334_v3 = vpop.permute.xlu1 %1333 }
 0x65a   : > { %v1328_v4 = vpop.permute.xlu0 %1327  ;;  %v1338_v6 = vsel %vm1335_vm10, %v1332_v63, %v1334_v3 }
 0x65b   : > { %v1336_v7 = vsel %vm1335_vm10, %v1328_v4, %v1330_v1  ;;  %2035 = vmatpush3.msra.mxu1 %v1338_v6 }
 0x65c   : > { %1429 = vmatpush1.msra.mxu0 %v1336_v7  ;;  %2037 = vmatmul.mubr.msk.f32.vlgmr.msra.gmra.mxu1 %vm416_vm6, %v1952_v5 }
 0x65d   : > { %1954 = vmatmul.mubr.msk.f32.vlgmr.msra.gmra.mxu0 %vm416_vm6, %v1952_v5 }
 0x667   : > { %v1393_v8 = vpop.permute.xlu0 %1392 }
 0x71c   : > { %v1535_v10 = vpop.f32.mrf.mxu1 }
 0x71d   : > { %v1464_v9 = vpop.f32.mrf.mxu0  ;;  %v1536_v12 = vadd.f32 %v1535_v10, %v1393_v8 }
 0x71e   : > { %v1465_v11 = vadd.f32 %v1464_v9, %v1393_v8  ;;  %v2038_v14 = vpop.f32.mrf.mxu1 }
 0x71f   : > { %v1466_v13 = vpop.f32.mrf.mxu0  ;;  %vm1541_vm12 = vcmp.ge.f32.partialorder %v1536_v12, 0.0  ;;  %v1544_v16 = vmul.f32 0.1, %v1536_v12 }
 0x720   : > { %vm1539_vm11 = vcmp.ge.f32.partialorder %v1465_v11, 0.0  ;;  %v1542_v15 = vmul.f32 0.1, %v1465_v11  ;;  %v1467_v18 = vadd.f32 %v1466_v13, %v1393_v8 }
 0x721   : > { %v1547_v20 = vsel %vm1541_vm12, %v1536_v12, %v1544_v16  ;;  %1553 = sbr.rel (%p1931_p10) target bundleno = 1832 (0x728), region = 96 }
 0x722   : > { %v1545_v19 = vsel %vm1539_vm11, %v1465_v11, %v1542_v15  ;;  %1550 = vst [vmem:[#allocation3 + $0x10] sm:$0xff] %v1547_v20  ;;  %vm1540_vm13 = vcmp.ge.f32.partialorder %v1467_v18, 0.0  ;;  %v1543_v21 = vmul.f32 0.1, %v1467_v18 }
 0x723   : > { %1548 = vst [vmem:[#allocation3 + $0x18] sm:$0xff] %v1545_v19 }
 0x724   : > { %v1546_v22 = vsel %vm1540_vm13, %v1467_v18, %v1543_v21 }
 0x725   : > { %1549 = vst [vmem:[#allocation3 + $0x8] sm:$0xff] %v1546_v22 }
 0x726   : > { %v2357_v23 = vmov 0.0  }
 0x727   : > { %1554 = vst [vmem:[#allocation3 + $0x18] sm:$0xff] %v2357_v23 }
 0x728 PF: > { %1557 = sbr.rel (%p1932_p13) target bundleno = 1839 (0x72f), region = 100 }
 0x72d   : > { %v2358_v24 = vmov 0.0  }
 0x72e   : > { %1558 = vst [vmem:[#allocation3 + $0x10] sm:$0xff] %v2358_v24 }
 0x72f PF: > { %1700 = vmatprep.mubr.f32.mxu0 %v2336_v0  ;;  %2039 = vmatprep.subr.mxu1 %v2336_v0  ;;  %v1559_v28 = vld [vmem:[#allocation3 + $0x20] sm:$0xff]  ;;  %v1958_v30 = vld [vmem:[%s2782_s5 + $0x10] sm:$0xff]  ;;  %v1777_v47 = vld [vmem:[#allocation2] sm:$0xff]  ;;  %s1804_s8 = sshll.u32 %s255_s7, 4  ;;  %s2359_s23 = smov [#allocation9]   ;;  %s2723_s8 = int_to_ptr.vmem [resolvable:$true] %s1804_s8 }
 0x730   : > { %v1591_v25 = vld [vmem:[#allocation3 + $0x8] sm:$0xff]  ;;  %v1590_v26 = vld [vmem:[#allocation3 + $0x18] sm:$0xff]  ;;  %2045 = vmatprep.mubr.msk.f32.mxu1 %vm2342_vm3, %v2336_v0  ;;  %2160 = vset.pattern.permute.xlu0 %v2343_v17  ;;  %v1593_v29 = vld [vmem:[#allocation3] sm:$0xff]  ;;  %s2231_s4 = scalar_lea.vmem %s2723_s8, 128  ;;  %s2235_s26 = sshll.u32 %s2359_s23, 4  ;;  %s2236_s26 = int_to_ptr.vmem [resolvable:$false] %s2235_s26 }
 0x731   : > { %1600 = vrot.lane.b32.xlu0 %v1591_v25, %s2341_s25  ;;  %1598 = vrot.lane.b32.xlu1 %v1590_v26, %s2341_s25  ;;  %v1616_v40 = vld [vmem:[#allocation6 + $0x10] sm:$0xff]  ;;  %v1778_v50 = vld [vmem:[#allocation2 + $0x8] sm:$0xff]  ;;  %p2232_p0 = scmp.ne.s32.totalorder %s2723_s8, %s2231_s4  ;;  %s2237_s19 = scalar_lea.vmem %s2236_s26, 256 }
 0x732   : > { %v1779_v54 = vld [vmem:[#allocation2 + $0x10] sm:$0xff]  ;;  %p2238_p4 = scmp.lt.s32.totalorder %s2723_s8, %s2236_s26  ;;  %p2239_p5 = scmp.lt.s32.totalorder %s2237_s19, %s2231_s4 }
 0x733   : > { %p2233_p1 = pnand %p2232_p0, %p2447_p3 }
 0x734   : > { %p2240_p12 = por %p2239_p5, %p2238_p4 }
 0x735   : > { %v1592_v27 = vld [vmem:[#allocation3 + $0x10] sm:$0xff]  ;;  %1569 = vrot.lane.b32.xlu1 %v1590_v26, %s2344_s27  ;;  %p2234_p2 = pneg %p2233_p1 }
 0x736   : > { %1602 = vrot.lane.b32.xlu0 %v1592_v27, %s2341_s25 }
 0x737   : > { %p2241_p6 = pnand %p2240_p12, %p2234_p2 }
 0x739   : > { %1567 = vrot.lane.b32.xlu1 %v1559_v28, %s2344_s27 }
 0x73a   : > { %1571 = vrot.lane.b32.xlu0 %v1591_v25, %s2344_s27 }
 0x73d   : > { %1573 = vrot.lane.b32.xlu1 %v1592_v27, %s2344_s27 }
 0x73e   : > { %1604 = vrot.lane.b32.xlu0 %v1593_v29, %s2341_s25  ;;  %s1800_s25 = sadd.s32 %s2315_s24, %s2504_s15  ;;  %s2805_s24 = sand.u32 1, %s2307_s22  }
 0x73f   : > { %s1963_s27 = sshll.u32 %s1800_s25, 7  ;;  %s1789_s15 = scalar_lea.sflag [#allocation8], %s2805_s24 }
 0x740   : > { %s2721_s18 = scalar_lea.hbm %s2783_s6, %s1963_s27 }
 0x742   : > { %1630 = vperm.xlu0 %2160, %v1958_v30  }
 0x7a3   : > { %v1601_v17 = vpop.permute.xlu0 %1600  ;;  %v1599_v31 = vpop.permute.xlu1 %1598 }
 0x7a4   : > { %v1606_v32 = vsel %vm390_vm4, %v1599_v31, %v1601_v17 }
 0x7a7   : > { %v1570_v34 = vpop.permute.xlu1 %1569 }
 0x7a8   : > { %v1603_v33 = vpop.permute.xlu0 %1602 }
 0x7a9   : > { %v1607_v35 = vsel %vm390_vm4, %v1601_v17, %v1603_v33 }
 0x7aa   : > { %1662 = vmatprep.subr.mxu0 %v1607_v35 }
 0x7ab   : > { %1663 = vmatpush1.msra.mxu0 %v1606_v32  ;;  %v1568_v37 = vpop.permute.xlu1 %1567 }
 0x7ac   : > { %v1572_v36 = vpop.permute.xlu0 %1571  ;;  %1664 = vmatprep.subr.mxu0 %v1591_v25  ;;  %v1575_v39 = vsel %vm358_vm5, %v1568_v37, %v1570_v34 }
 0x7ad   : > { %v1576_v38 = vsel %vm358_vm5, %v1570_v34, %v1572_v36  ;;  %1665 = vmatpush1.msra.mxu0 %v1590_v26 }
 0x7ae   : > { %1666 = vmatprep.subr.mxu0 %v1576_v38 }
 0x7af   : > { %1667 = vmatpush1.msra.mxu0 %v1575_v39  ;;  %v1574_v42 = vpop.permute.xlu1 %1573 }
 0x7b0   : > { %v1605_v41 = vpop.permute.xlu0 %1604  ;;  %1959 = vmatmul.mubr.msk.f32.vlgmr.msra.gmra.mxu0 %vm416_vm6, %v1616_v40  ;;  %v1577_v44 = vsel %vm358_vm5, %v1572_v36, %v1574_v42 }
 0x7b1   : > { %v1608_v43 = vsel %vm390_vm4, %v1603_v33, %v1605_v41 }
 0x7b2   : > { %2040 = vmatpush3.msra.mxu1 %v1608_v43 }
 0x7b3   : > { %2041 = vmatprep.subr.mxu1 %v2336_v0 }
 0x7b4   : > { %2042 = vmatpush3.msra.mxu1 %v1592_v27 }
 0x7b5   : > { %2043 = vmatprep.subr.mxu1 %v2336_v0 }
 0x7b6   : > { %2044 = vmatpush3.msra.mxu1 %v1577_v44 }
 0x7b7   : > { %2046 = vmatmul.mubr.msk.f32.vlgmr.msra.gmra.mxu1 %vm416_vm6, %v1616_v40 }
 0x7bd   : > { %v1631_v45 = vpop.permute.xlu0 %1630 }
 0x870   : > { %v1702_v46 = vpop.f32.mrf.mxu0 }
 0x871   : > { %v1703_v48 = vadd.f32 %v1702_v46, %v1631_v45 }
 0x872   : > { %v1704_v49 = vpop.f32.mrf.mxu0 }
 0x873   : > { %v1780_v51 = vadd.f32 %v1777_v47, %v1703_v48  ;;  %v1705_v52 = vadd.f32 %v1704_v49, %v1631_v45 }
 0x875   : > { %1783 = vst [vmem:[#allocation2] sm:$0xff] %v1780_v51  ;;  %v1781_v0 = vadd.f32 %v1778_v50, %v1705_v52 }
 0x877   : > { %1784 = vst [vmem:[#allocation2 + $0x8] sm:$0xff] %v1781_v0  ;;  %v1773_v53 = vpop.f32.mrf.mxu1  ;;  %1787 = vst [vmem:[%s255_s7] sm:$0xff] %v1781_v0 }
 0x878   : > { %v1774_v55 = vadd.f32 %v1773_v53, %v1631_v45 }
 0x879   : > { %2244 = shalt.err (!%p2241_p6)
}
 0x87a   : > { %s2245_s20 = scalar_lea.hbm %s2721_s18, 128  ;;  %s2249_s14 = scalar_lea.hbm %s2783_s6, 512 }
 0x87b   : > { %p2246_p7 = scmp.ne.s32.totalorder %s2721_s18, %s2245_s20  ;;  %p2250_p10 = scmp.lt.s32.totalorder %s2721_s18, %s2783_s6 }
 0x87c   : > { %p2251_p13 = scmp.lt.s32.totalorder %s2249_s14, %s2245_s20 }
 0x87d   : > { %p2247_p9 = pnand %p2246_p7, %p2447_p3 }
 0x87e   : > { %p2252_p0 = por %p2251_p13, %p2250_p10 }
 0x87f   : > { %p2248_p11 = pneg %p2247_p9 }
 0x881   : > { %p2253_p1 = pnand %p2252_p0, %p2248_p11 }
 0x883   : > { %2256 = shalt.err (!%p2253_p1)
}
 0x884   : > { %2052 = dma.vmem_to_hbm [thread:$0]  (%p2447_p3), %s2723_s8, 128, %s2721_s18, %s1789_s15   ;;  %v2047_v56 = vpop.f32.mrf.mxu1  ;;  %v1782_v57 = vadd.f32 %v1779_v54, %v1774_v55 }
 0x886   : > { %1785 = vst [vmem:[#allocation2 + $0x10] sm:$0xff] %v1782_v57 }
 0x887 PF: > { %p2064_p2 = scmp.ge.s32.totalorder %s2331_s28, 2  ;;  %s1816_s13 = sand.u32 1, %s2303_s21  }
 0x888   : > { %s1817_s16 = scalar_lea.sflag [#allocation8], %s1816_s13 }
 0x889   : > { %p2059_p4 = pnand %p2064_p2, %p2456_p8 }
 0x88b   : > { %p2060_p5 = pneg %p2059_p4 }
 0x88d   : > { %2298 = dma.done.wait (%p2060_p5), %s1817_s16, 128  }
 0x88e   : > { %2300 = vsyncadd (%p2060_p5), %s1817_s16, 4294967168  ;;  %s20_s28 = sadd.s32 1, %s2331_s28   ;;  %s2807_s11 = sld [smem:[#allocation20_spill]] }
 0x88f   : > { %p17_p12 = scmp.ge.s32.totalorder %s20_s28, 6   ;;  %s2808_s23 = sld [smem:[#allocation26_spill]] }
 0x890   : > { %s2809_s24 = sld [smem:[#allocation21_spill]]  ;;  %s2813_s21 = smov %s2307_s22 }
 0x891   : > { %s2810_s25 = sld [smem:[#allocation22_spill]]  ;;  %19 = sbr.rel (!%p17_p12) target bundleno = 8 (0x8), region = 149 }
 0x892   : > { %s2811_s26 = sld [smem:[#allocation23_spill]] }
 0x893   : > { %s2812_s27 = sld [smem:[#allocation24_spill]] }
 0x894   : > { %s2814_s22 = smov %s2807_s11 }
 0x896   :  { %1822 = vsyncpa [#allocation7], 1 }
 0x897   :  { %1824 = vsyncpa [#allocation7 + $0x1], 1 }
 0x898   :  { %1825 = vsyncpa [#allocation8], 1 }
 0x899   :  { %1827 = vsyncpa [#allocation8 + $0x1], 1 }
 0x89a   :  { %1828 = vsyncmov [#allocation5] }
 0x89d   :  { %s1829_s8 = vpop.sfrf %1828 }
 0x89e   :  { %p1966_p3 = scmp.ne.s32.totalorder %s1829_s8, 0 }
 0x8a0   :  { %1833 = shalt.err (%p1966_p3)  }
 0x8a1   :  { %1835 = vsyncmov [#allocation5 + $0x1] }
 0x8a4   :  { %s1836_s12 = vpop.sfrf %1835 }
 0x8a5   :  { %p1967_p8 = scmp.ne.s32.totalorder %s1836_s12, 0 }
 0x8a7   :  { %1840 = shalt.err (%p1967_p8)  }

</bundles_post_ra>
